<compile_context>
chip_gen: v7x
topology: tpu7x:2x2x1
jax: 0.10.0
libtpu: 0.0.40
codegen_flags: <defaults>
</compile_context>

<pallas_src>
import jax
import jax.numpy as jnp
from jax import lax
from jax.experimental import pallas as pl
from jax.experimental.pallas import tpu as pltpu


# Conservative per-core VMEM budget: comfortably inside v7x's 64 MiB physical
# VMEM (and far below v5e/v6e's 128 MiB).
_VMEM_BUDGET_BYTES = 40 * 1024 * 1024


def build_pos_embeddings(max_time_steps: int, embedding_size: int, n: int = 10000,
                         dtype=jnp.float32):
    """Deterministic parameter init, mirrors the PyTorch __init__ exactly.

    (Pass dtype=jnp.bfloat16 to halve table/output HBM traffic on v5e; the
    kernel below is dtype-agnostic.)
    """
    i = jnp.arange(embedding_size // 2, dtype=jnp.float32)
    k = jnp.arange(max_time_steps, dtype=jnp.float32)[:, None]
    denom = jnp.power(jnp.float32(n), 2.0 * i / jnp.float32(embedding_size))
    angles = k / denom                                    # (T, E//2)
    table = jnp.zeros((max_time_steps, embedding_size), dtype=jnp.float32)
    table = table.at[:, 0::2].set(jnp.sin(angles))
    table = table.at[:, 1::2].set(jnp.cos(angles))
    return table.astype(dtype)


def _round_up(x: int, m: int) -> int:
    return (x + m - 1) // m * m


def _gather_kernel(t_ref, table_ref, out_ref):
    # t_ref     : VMEM (rows, 1) int32     -- this step's timestep indices
    # table_ref : VMEM (max_t, emb)        -- full table, resident (constant index_map)
    # out_ref   : VMEM (rows, emb)         -- dense, lane-aligned output slab
    rows = out_ref.shape[0]
    max_t = table_ref.shape[0]

    idx = t_ref[...]                                               # (rows, 1)
    col = lax.broadcasted_iota(jnp.int32, (rows, max_t), 1)        # (rows, max_t)
    one_hot = (idx == col).astype(table_ref.dtype)                 # (rows, max_t)

    # Gather as a matmul on the otherwise-idle MXU.  HIGHEST precision keeps the
    # f32 one-hot @ f32 table exact (only one nonzero term per row).
    out_ref[...] = jnp.dot(
        one_hot,
        table_ref[...],
        preferred_element_type=jnp.float32,
        precision=lax.Precision.HIGHEST,
    ).astype(out_ref.dtype)


def _build_gather_call(batch_p, rows, max_t, emb, dtype,
                       single_buffer_table, vmem_limit_bytes):
    table_index_map = lambda i: (0, 0)   # constant block index => fetched once
    if single_buffer_table:
        # Table never changes across the grid; one buffer is enough (halves the
        # VMEM footprint for large tables).
        table_spec = pl.BlockSpec((max_t, emb), table_index_map,
                                  pipeline_mode=pl.Buffered(1))
    else:
        table_spec = pl.BlockSpec((max_t, emb), table_index_map)

    return pl.pallas_call(
        _gather_kernel,
        out_shape=jax.ShapeDtypeStruct((batch_p, emb), dtype),
        grid_spec=pltpu.PrefetchScalarGridSpec(
            num_scalar_prefetch=0,
            grid=(batch_p // rows,),
            in_specs=[
                # (rows, 1): sublane dim is a multiple of 8, lane dim equals the
                # full array dim, so the (8, 128) rule is satisfied.
                pl.BlockSpec((rows, 1), lambda i: (i, 0)),
                table_spec,
            ],
            out_specs=pl.BlockSpec((rows, emb), lambda i: (i, 0)),
        ),
        compiler_params=pltpu.CompilerParams(
            dimension_semantics=("parallel",),      # rows are independent; v7x shards steps
            vmem_limit_bytes=vmem_limit_bytes,
        ),
    )


def positional_encoding_forward(t, pos_embeddings, *,
                                rows_per_step: int = 512,
                                min_kernel_batch: int = 128):
    """Equivalent of `self.pos_embeddings[t, :]` for 1-D integer t."""
    max_t, emb = pos_embeddings.shape
    itemsize = jnp.dtype(pos_embeddings.dtype).itemsize

    # Clamp to valid rows (PyTorch indexing would raise on OOB; here we clamp).
    t = jnp.clip(t.astype(jnp.int32), 0, max_t - 1)
    batch = t.shape[0]

    # Small-batch fast path: launch + pipeline setup is pure overhead there;
    # XLA's fused gather is already at the HBM floor.
    if batch < min_kernel_batch:
        return pos_embeddings[t, :]

    # Pick the output slab height: as large as requested, but keep >= 2 grid
    # steps so megacore (v7x) has something to shard; always a multiple of 8.
    rows = min(rows_per_step, _round_up(max(batch // 2, 8), 8))
    rows = max(8, _round_up(rows, 8))
    num_steps = -(-batch // rows)               # cdiv
    batch_p = num_steps * rows

    # Conservative VMEM estimate (worst case: 2x table, double-buffered out/t).
    needed = (2 * max_t * emb * itemsize          # table (assume 2 buffers worst case)
              + 2 * rows * emb * itemsize         # output slab, double-buffered
              + 2 * rows * 4)                     # index column, double-buffered
    if needed > _VMEM_BUDGET_BYTES:
        # Table too big to keep VMEM-resident on every generation (notably v7x's
        # 64 MiB per-TC VMEM).  The plain XLA gather stays HBM-bound, which is
        # the same roofline this kernel targets.
        # TODO(synk): for very large tables, a data-dependent row fetch
        # (pl.Element(1) table rows or manual double-buffered row DMAs) would
        # avoid materializing the full table if this fallback ever shows up hot.
        return pos_embeddings[t, :]

    vmem_limit = int(min(_VMEM_BUDGET_BYTES, max(2 * needed, 32 * 1024 * 1024)))

    # Pad batch to a multiple of `rows` so every output block is a full tile
    # (unmasked stores, dense writeback).  Padded rows gather row 0, sliced off.
    t_col = t
    if batch_p != batch:
        t_col = jnp.pad(t_col, (0, batch_p - batch))
    t_col = t_col.reshape(batch_p, 1)

    try:
        call = _build_gather_call(batch_p, rows, max_t, emb, pos_embeddings.dtype,
                                  single_buffer_table=True,
                                  vmem_limit_bytes=vmem_limit)
        out = call(t_col, pos_embeddings)
    except Exception:
        # Some builds may reject Buffered(1) on the main pipeline; default double
        # buffering still issues only ONE table DMA (block index never changes),
        # it just reserves a second (unused) buffer.
        call = _build_gather_call(batch_p, rows, max_t, emb, pos_embeddings.dtype,
                                  single_buffer_table=False,
                                  vmem_limit_bytes=vmem_limit)
        out = call(t_col, pos_embeddings)

    return out[:batch]


if __name__ == "__main__":
    MAX_T = 64           # max_time_steps
    EMB = 128            # embedding_size
    BATCH = 256          # large enough to take the Pallas kernel path (>=128)

    table = build_pos_embeddings(MAX_T, EMB)

    key = jax.random.PRNGKey(0)
    t = jax.random.randint(key, (BATCH,), 0, MAX_T, dtype=jnp.int32)

    out = jax.block_until_ready(positional_encoding_forward(t, table))
    ref = table[t, :]
    assert out.shape == (BATCH, EMB)
    # Tolerance 1e-3: wrong-row gathers would show O(1) error, so this firmly
    # validates the gather while leaving margin for any MXU f32 pass-splitting
    # (HIGHEST precision is exact in practice).
    assert float(jnp.max(jnp.abs(out - ref))) < 1e-3, "mismatch vs reference (kernel path)"

    # Odd batch through the kernel path (exercises padding; force kernel use).
    t_odd = jax.random.randint(jax.random.PRNGKey(1), (37,), 0, MAX_T, dtype=jnp.int32)
    out_odd = jax.block_until_ready(
        positional_encoding_forward(t_odd, table, min_kernel_batch=0))
    assert out_odd.shape == (37, EMB)
    assert float(jnp.max(jnp.abs(out_odd - table[t_odd, :]))) < 1e-3, "mismatch (padded batch)"

    # Small-batch fast path (plain XLA gather).
    t_small = jax.random.randint(jax.random.PRNGKey(2), (8,), 0, MAX_T, dtype=jnp.int32)
    out_small = jax.block_until_ready(positional_encoding_forward(t_small, table))
    assert out_small.shape == (8, EMB)
    assert jnp.allclose(out_small, table[t_small, :], atol=1e-6), "mismatch (fast path)"

    print("KERNEL_OK")
</pallas_src>

<mosaic_0001>
module attributes {stable_mosaic.version = 11 : i64} {
  func.func @_gather_kernel(%arg0: i32, %arg1: memref<128x1xi32, #tpu.memory_space<vmem>>, %arg2: memref<64x128xf32, #tpu.memory_space<vmem>>, %arg3: memref<128x128xf32, #tpu.memory_space<vmem>>) attributes {dimension_semantics = [#tpu.dimension_semantics<parallel>], iteration_bounds = array<i64: 2>, scalar_prefetch = 0 : i64, scratch_operands = 0 : i64, tpu.core_type = #tpu.core_type<tc>, window_params = [{transform_indices = @transform_0, window_bounds = array<i64: 128, 1>}, {pipeline_mode = #tpu.pipeline_mode<synchronous>, transform_indices = @transform_1, window_bounds = array<i64: 64, 128>}, {transform_indices = @transform_2, window_bounds = array<i64: 128, 128>}]} {
    %c0 = arith.constant 0 : index
    %c0_0 = arith.constant 0 : index
    %0 = vector.load %arg1[%c0, %c0_0] : memref<128x1xi32, #tpu.memory_space<vmem>>, vector<128x1xi32>
    %1 = tpu.iota {dimensions = array<i32: 1>} : vector<128x64xi32>
    %2 = vector.broadcast %0 : vector<128x1xi32> to vector<128x64xi32>
    %3 = arith.cmpi eq, %2, %1 : vector<128x64xi32>
    %4 = arith.extui %3 : vector<128x64xi1> to vector<128x64xi32>
    %5 = arith.sitofp %4 : vector<128x64xi32> to vector<128x64xf32>
    %c0_1 = arith.constant 0 : index
    %c0_2 = arith.constant 0 : index
    %6 = vector.load %arg2[%c0_1, %c0_2] : memref<64x128xf32, #tpu.memory_space<vmem>>, vector<64x128xf32>
    %cst = arith.constant dense<0.000000e+00> : vector<128x128xf32>
    %7 = tpu.matmul %5, %6, %cst {dimension_numbers = #tpu.dot_dimension_numbers<[1], [0], [0], [1], [0, 0, 1, 1], [], []>, precision = #tpu.contract_precision<fp32>} : vector<128x64xf32>, vector<64x128xf32>, vector<128x128xf32> -> vector<128x128xf32>
    %c0_3 = arith.constant 0 : index
    %c0_4 = arith.constant 0 : index
    %8 = vector.load %arg3[%c0_3, %c0_4] : memref<128x128xf32, #tpu.memory_space<vmem>>, vector<128x128xf32>
    tpu.vector_store %arg3[%c0_3, %c0_4], %7 {strides = array<i32>} : memref<128x128xf32, #tpu.memory_space<vmem>>, vector<128x128xf32>,
    return
  }
  func.func @transform_0(%arg0: i32) -> (i32, i32) {
    %c0_i32 = arith.constant 0 : i32
    %c0_i32_0 = arith.constant 0 : i32
    return %arg0, %c0_i32 : i32, i32
  }
  func.func @transform_1(%arg0: i32) -> (i32, i32) {
    %c0_i32 = arith.constant 0 : i32
    %c0_i32_0 = arith.constant 0 : i32
    %c0_i32_1 = arith.constant 0 : i32
    return %c0_i32, %c0_i32_0 : i32, i32
  }
  func.func @transform_2(%arg0: i32) -> (i32, i32) {
    %c0_i32 = arith.constant 0 : i32
    %c0_i32_0 = arith.constant 0 : i32
    return %arg0, %c0_i32 : i32, i32
  }
}

module attributes {stable_mosaic.version = 11 : i64} {
  func.func @_gather_kernel(%arg0: i32, %arg1: memref<128x1xi32, #tpu.memory_space<vmem>>, %arg2: memref<64x128xf32, #tpu.memory_space<vmem>>, %arg3: memref<128x128xf32, #tpu.memory_space<vmem>>) attributes {dimension_semantics = [#tpu.dimension_semantics<parallel>], iteration_bounds = array<i64: 2>, scalar_prefetch = 0 : i64, scratch_operands = 0 : i64, tpu.core_type = #tpu.core_type<tc>, window_params = [{transform_indices = @transform_0, window_bounds = array<i64: 128, 1>}, {pipeline_mode = #tpu.pipeline_mode<synchronous>, transform_indices = @transform_1, window_bounds = array<i64: 64, 128>}, {transform_indices = @transform_2, window_bounds = array<i64: 128, 128>}]} {
    %c0 = arith.constant 0 : index
    %c0_0 = arith.constant 0 : index
    %0 = vector.load %arg1[%c0, %c0_0] : memref<128x1xi32, #tpu.memory_space<vmem>>, vector<128x1xi32>
    %1 = tpu.iota {dimensions = array<i32: 1>} : vector<128x64xi32>
    %2 = vector.broadcast %0 : vector<128x1xi32> to vector<128x64xi32>
    %3 = arith.cmpi eq, %2, %1 : vector<128x64xi32>
    %4 = arith.extui %3 : vector<128x64xi1> to vector<128x64xi32>
    %5 = arith.sitofp %4 : vector<128x64xi32> to vector<128x64xf32>
    %c0_1 = arith.constant 0 : index
    %c0_2 = arith.constant 0 : index
    %6 = vector.load %arg2[%c0_1, %c0_2] : memref<64x128xf32, #tpu.memory_space<vmem>>, vector<64x128xf32>
    %cst = arith.constant dense<0.000000e+00> : vector<128x128xf32>
    %7 = tpu.matmul %5, %6, %cst {dimension_numbers = #tpu.dot_dimension_numbers<[1], [0], [0], [1], [0, 0, 1, 1], [], []>, precision = #tpu.contract_precision<fp32>} : vector<128x64xf32>, vector<64x128xf32>, vector<128x128xf32> -> vector<128x128xf32>
    %c0_3 = arith.constant 0 : index
    %c0_4 = arith.constant 0 : index
    %8 = vector.load %arg3[%c0_3, %c0_4] : memref<128x128xf32, #tpu.memory_space<vmem>>, vector<128x128xf32>
    tpu.vector_store %arg3[%c0_3, %c0_4], %7 {strides = array<i32>} : memref<128x128xf32, #tpu.memory_space<vmem>>, vector<128x128xf32>,
    return
  }
  func.func @transform_0(%arg0: i32) -> (i32, i32) {
    %c0_i32 = arith.constant 0 : i32
    %c0_i32_0 = arith.constant 0 : i32
    return %arg0, %c0_i32 : i32, i32
  }
  func.func @transform_1(%arg0: i32) -> (i32, i32) {
    %c0_i32 = arith.constant 0 : i32
    %c0_i32_0 = arith.constant 0 : i32
    %c0_i32_1 = arith.constant 0 : i32
    return %c0_i32, %c0_i32_0 : i32, i32
  }
  func.func @transform_2(%arg0: i32) -> (i32, i32) {
    %c0_i32 = arith.constant 0 : i32
    %c0_i32_0 = arith.constant 0 : i32
    return %arg0, %c0_i32 : i32, i32
  }
}

</mosaic_0001>

<bundles_post_ra>
// kernel: tpu_custom_call.1
= control target key start
LH: loop header
LB: loop body
LE: loop exit
PB: predicated region body
PF: predicated region fallthrough
CT: control target
= control target key end

     0   :  { %7 = vsyncpa [#allocation3], 0  ;;  %s2917_s0 = inlined_call_operand.vmem [shape: s32[256,1], index: 0, kind: input, shape index: {}]   ;;  %s2918_s1 = inlined_call_operand.vmem [shape: f32[64,128], index: 1, kind: input, shape index: {}]   ;;  %s2919_s2 = inlined_call_operand.hbm [shape: f32[256,128], index: 2, kind: output, shape index: {}]  }
   0x1   :  { %9 = vsyncpa [#allocation3 + $0x1], 0  ;;  %s2356_s9 = smov 0   ;;  %s2358_s10 = smov 0  }
   0x2   :  { %s2360_s11 = smov 0   ;;  %s2362_s12 = smov 0  }
   0x3 LB: > { %s2377_s13 = sadd.s32 4294967295, %s2334_s12   ;;  %s1590_s14 = sadd.s32 4294967294, %s2334_s12   ;;  %s2334_s12 = sphi %s2362_s12, %s2925_s12   ;;  %s2330_s11 = sphi %s2360_s11, %s2924_s11   ;;  %s2326_s10 = sphi %s2358_s10, %s2923_s10   ;;  %s2322_s9 = sphi %s2356_s9, %s2922_s9  }
   0x4   : > { %s2381_s15 = sadd.s32 1, %s2334_s12   ;;  %s69_s16 = sadd.s32 1, %s2330_s11 }
   0x5   : > { %s66_s17 = ssub.s32 %s2334_s12, %s2381_s15  ;;  %p79_p0 = scmp.ne.s32.totalorder %s2330_s11, %s2326_s10 }
   0x6   : > { %p67_p1 = scmp.eq.s32.totalorder %s66_s17, 0  ;;  %p80_p2 = scmp.eq.s32.totalorder %s2377_s13, 1 }
   0x7   : > { %p85_p3 = scmp.ne.s32.totalorder %s2326_s10, %s2322_s9  ;;  %p86_p4 = scmp.eq.s32.totalorder %s1590_s14, 1 }
   0x8   : > { %s2392_s18 = scalar_select %p67_p1, %s2330_s11, %s69_s16  }
   0x9   : > { %p2394_p5 = por %p80_p2, %p79_p0  ;;  %p2398_p6 = por %p86_p4, %p85_p3 }
   0xa   : > { %p1593_p7 = scmp.ge.s32.totalorder %s2334_s12, 1  ;;  %p116_p8 = scmp.lt.s32.totalorder %s2334_s12, 3 }
   0xc   : > { %p117_p9 = pnand %p1593_p7, %p116_p8 }
   0xd   : > { %s1595_s21 = sshll.u32 (!%p117_p9), %s2377_s13, 4  ;;  %v259_v0 = vld [vmem:[%s2918_s1] sm:$0xff] (!%p117_p9)  ;;  %v260_v1 = vld [vmem:[%s2918_s1 + $0x8] sm:$0xff] (!%p117_p9)  ;;  %v2414_v2 = vld [vmem:[%s2918_s1 + $0x10] sm:$0xff] (!%p117_p9)  ;;  %v2336_v3 = vmov (!%p117_p9), 0   ;;  %vm267_vm0 = vcmask (!%p117_p9), 523264  }
   0xe   : > { %120 = sbr.rel (%p117_p9) target bundleno = 490 (0x1ea), region = 28  ;;  %2271 = vset.pattern.permute.xlu1 (!%p117_p9), %v2336_v3  ;;  %2270 = vset.pattern.permute.xlu0 (!%p117_p9), %v2336_v3  ;;  %p139_p10 = scmp.lt.s32.totalorder (!%p117_p9), %s1595_s21, 31  ;;  %v317_v4 = vand.u32 (!%p117_p9), 4294901760, %v259_v0  ;;  %v320_v5 = vand.u32 (!%p117_p9), 4294901760, %v260_v1  ;;  %v2419_v6 = vld [vmem:[%s2918_s1 + $0x18] sm:$0xff] (!%p117_p9)  ;;  %v323_v7 = vand.u32 (!%p117_p9), 4294901760, %v2414_v2 }
   0xf   : > { %v326_v8 = vand.u32 (!%p117_p9), 4294901760, %v2419_v6  ;;  %v2443_v11 = vld [vmem:[%s2918_s1 + $0x20] sm:$0xff] (!%p117_p9)  ;;  %v2448_v12 = vld [vmem:[%s2918_s1 + $0x28] sm:$0xff] (!%p117_p9)  ;;  %v2471_v20 = vld [vmem:[%s2918_s1 + $0x30] sm:$0xff] (!%p117_p9)  ;;  %s135_s23 = sand.u32 (!%p117_p9), 1, %s2326_s10   ;;  %s1666_s26 = sshll.u32 (!%p117_p9), %s2377_s13, 11 }
  0x10   : > { %v2423_v9 = vpack.c.bf16 (!%p117_p9), %v320_v5, %v317_v4  ;;  %v329_v15 = vand.u32 (!%p117_p9), 4294901760, %v2443_v11  ;;  %v332_v16 = vand.u32 (!%p117_p9), 4294901760, %v2448_v12  ;;  %v2476_v21 = vld [vmem:[%s2918_s1 + $0x38] sm:$0xff] (!%p117_p9)  ;;  %v335_v24 = vand.u32 (!%p117_p9), 4294901760, %v2471_v20  ;;  %s1594_s24 = sshll.u32 (!%p117_p9), %s135_s23, 7  ;;  %s2876_s13 = scalar_lea.sflag (!%p117_p9), [#allocation3], %s135_s23 }
  0x11   : > { %v2429_v10 = vpack.c.bf16 (!%p117_p9), %v326_v8, %v323_v7  ;;  %v338_v25 = vand.u32 (!%p117_p9), 4294901760, %v2476_v21  ;;  %v551_v31 = vsub.f32 (!%p117_p9), %v259_v0, %v317_v4  ;;  %v558_v32 = vsub.f32 (!%p117_p9), %v260_v1, %v320_v5  ;;  %s2847_s25 = scalar_lea.vmem (!%p117_p9), [#allocation2], %s1594_s24  ;;  %s2338_s4 = smov (!%p117_p9), [#allocation2]  }
  0x12   : > { %2100 = vmatprep.subr.bf16.mxu0 (!%p117_p9), %v2423_v9  ;;  %2052 = vmatprep.subr.bf16.mxu1 (!%p117_p9), %v2423_v9  ;;  %v2462_v19 = vpack.c.bf16 (!%p117_p9), %v332_v16, %v329_v15  ;;  %v565_v45 = vsub.f32 (!%p117_p9), %v2414_v2, %v323_v7  ;;  %v572_v46 = vsub.f32 (!%p117_p9), %v2419_v6, %v326_v8  ;;  %s1528_s27 = sshll.u32 (!%p117_p9), %s2847_s25, 4  ;;  %s2870_s27 = int_to_ptr.vmem [resolvable:$true] %s1528_s27 }
  0x13   : > { %2102 = vmatpush3.bf16.msra.mxu0 (!%p117_p9), %v2423_v9  ;;  %2054 = vmatpush3.bf16.msra.mxu1 (!%p117_p9), %v2423_v9  ;;  %v2484_v26 = vpack.c.bf16 (!%p117_p9), %v338_v25, %v335_v24  ;;  %v552_v35 = vand.u32 (!%p117_p9), 4294901760, %v551_v31  ;;  %v559_v36 = vand.u32 (!%p117_p9), 4294901760, %v558_v32  ;;  %v579_v56 = vsub.f32 (!%p117_p9), %v2443_v11, %v329_v15  ;;  %s2272_s3 = scalar_lea.vmem (!%p117_p9), %s2870_s27, 2048 }
  0x14   : > { %2104 = vmatprep.subr.bf16.mxu0 (!%p117_p9), %v2429_v10  ;;  %2056 = vmatprep.subr.bf16.mxu1 (!%p117_p9), %v2429_v10  ;;  %v566_v49 = vand.u32 (!%p117_p9), 4294901760, %v565_v45  ;;  %v573_v50 = vand.u32 (!%p117_p9), 4294901760, %v572_v46  ;;  %v586_v57 = vsub.f32 (!%p117_p9), %v2448_v12, %v332_v16  ;;  %v593_v0 = vsub.f32 (!%p117_p9), %v2471_v20, %v335_v24  ;;  %p2273_p11 = scmp.ne.s32.totalorder (!%p117_p9), %s2870_s27, %s2272_s3 }
  0x15   : > { %s2927_s21 = smov (!%p139_p10, %s1595_s21), 31  ;;  %v553_v37 = vsub.f32 %v551_v31, %v552_v35  ;;  %v560_v38 = vsub.f32 %v558_v32, %v559_v36  ;;  %v2496_v39 = vpack.c.bf16 %v559_v36, %v552_v35  ;;  %v580_v59 = vand.u32 4294901760, %v579_v56 }
  0x16   : > { %s1596_s30 = sshll.u32 %s2927_s21, 3  ;;  %v567_v51 = vsub.f32 %v565_v45, %v566_v49  ;;  %v574_v52 = vsub.f32 %v572_v46, %v573_v50  ;;  %v2512_v53 = vpack.c.bf16 %v573_v50, %v566_v49  ;;  %v587_v60 = vand.u32 4294901760, %v586_v57  ;;  %p2274_p12 = pnand %p2273_p11, %p2394_p5 }
  0x17   : > { %s2436_s5 = scalar_lea.vmem %s2917_s0, %s1596_s30  ;;  %2106 = vmatpush3.bf16.msra.mxu0 %v2429_v10  ;;  %2058 = vmatpush3.bf16.msra.mxu1 %v2429_v10  ;;  %v554_v42 = vand.u32 4294901760, %v553_v37  ;;  %v561_v43 = vand.u32 4294901760, %v560_v38  ;;  %v581_v61 = vsub.f32 %v579_v56, %v580_v59  ;;  %v600_v1 = vsub.f32 %v2476_v21, %v338_v25  ;;  %s2868_s30 = scalar_lea.hbm %s2919_s2, %s1666_s26 }
  0x18   : > { %v147_v13 = vld [vmem:[%s2436_s5 + $0x10] sm:$0xff]  ;;  %v145_v14 = vld [vmem:[%s2436_s5] sm:$0xff]  ;;  %v148_v17 = vld [vmem:[%s2436_s5 + $0x18] sm:$0xff]  ;;  %2108 = vmatprep.subr.bf16.mxu0 %v2462_v19  ;;  %2060 = vmatprep.subr.bf16.mxu1 %v2462_v19  ;;  %v568_v54 = vand.u32 4294901760, %v567_v51  ;;  %v575_v55 = vand.u32 4294901760, %v574_v52  ;;  %v588_v62 = vsub.f32 %v586_v57, %v587_v60  ;;  %v2522_v63 = vpack.c.bf16 %v587_v60, %v580_v59  ;;  %p2275_p13 = pneg %p2274_p12 }
  0x19   : > { %170 = vperm.xlu1 %2271, %v147_v13   ;;  %164 = vperm.xlu0 %2270, %v145_v14   ;;  %v146_v18 = vld [vmem:[%s2436_s5 + $0x8] sm:$0xff]  ;;  %v149_v23 = vld [vmem:[%s2436_s5 + $0x20] sm:$0xff]  ;;  %v152_v27 = vld [vmem:[%s2436_s5 + $0x38] sm:$0xff]  ;;  %v2501_v44 = vpack.c.bf16 %v561_v43, %v554_v42  ;;  %v582_v2 = vand.u32 4294901760, %v581_v61  ;;  %v594_v4 = vand.u32 4294901760, %v593_v0  ;;  %v601_v5 = vand.u32 4294901760, %v600_v1 }
  0x1a   : > { %v150_v22 = vld [vmem:[%s2436_s5 + $0x28] sm:$0xff]  ;;  %v151_v28 = vld [vmem:[%s2436_s5 + $0x30] sm:$0xff]  ;;  %v153_v30 = vld [vmem:[%s2436_s5 + $0x40] sm:$0xff]  ;;  %v2520_v58 = vpack.c.bf16 %v575_v55, %v568_v54  ;;  %v589_v3 = vand.u32 4294901760, %v588_v62  ;;  %v2532_v15 = vpack.c.bf16 %v558_v32, %v551_v31  ;;  %v2534_v16 = vpack.c.bf16 %v572_v46, %v565_v45 }
  0x1b   : > { %2110 = vmatpush3.bf16.msra.mxu0 %v2462_v19  ;;  %2062 = vmatpush3.bf16.msra.mxu1 %v2462_v19  ;;  %v154_v29 = vld [vmem:[%s2436_s5 + $0x48] sm:$0xff]  ;;  %v156_v33 = vld [vmem:[%s2436_s5 + $0x58] sm:$0xff]  ;;  %v155_v34 = vld [vmem:[%s2436_s5 + $0x50] sm:$0xff]  ;;  %v595_v7 = vsub.f32 %v593_v0, %v594_v4  ;;  %v602_v8 = vsub.f32 %v600_v1, %v601_v5  ;;  %v2528_v11 = vpack.c.bf16 %v601_v5, %v594_v4  ;;  %v161_v20 = vlaneseq }
  0x1c   : > { %2112 = vmatprep.subr.bf16.mxu0 %v2484_v26  ;;  %2064 = vmatprep.subr.bf16.mxu1 %v2484_v26  ;;  %v158_v40 = vld [vmem:[%s2436_s5 + $0x68] sm:$0xff]  ;;  %v157_v41 = vld [vmem:[%s2436_s5 + $0x60] sm:$0xff]  ;;  %v160_v47 = vld [vmem:[%s2436_s5 + $0x78] sm:$0xff]  ;;  %v2526_v6 = vpack.c.bf16 %v589_v3, %v582_v2  ;;  %v2337_v24 = vmov 0.0  }
  0x1d   : > { %173 = vperm.xlu1 %2271, %v148_v17   ;;  %167 = vperm.xlu0 %2270, %v146_v18   ;;  %v159_v48 = vld [vmem:[%s2436_s5 + $0x70] sm:$0xff]  ;;  %v596_v12 = vand.u32 4294901760, %v595_v7  ;;  %v603_v13 = vand.u32 4294901760, %v602_v8  ;;  %v2536_v17 = vpack.c.bf16 %v586_v57, %v579_v56  ;;  %v2538_v18 = vpack.c.bf16 %v600_v1, %v593_v0  ;;  %s2276_s5 = sshll.u32 %s2338_s4, 4  ;;  %s2277_s5 = int_to_ptr.vmem [resolvable:$false] %s2276_s5 }
  0x1e   : > { %v2540_v21 = vand.u32 127, %v161_v20  ;;  %s2278_s6 = scalar_lea.vmem %s2277_s5, 4096  ;;  %p2279_p0 = scmp.lt.s32.totalorder %s2870_s27, %s2277_s5 }
  0x1f   : > { %2114 = vmatpush3.bf16.msra.mxu0 %v2484_v26  ;;  %2066 = vmatpush3.bf16.msra.mxu1 %v2484_v26  ;;  %v2530_v14 = vpack.c.bf16 %v603_v13, %v596_v12  ;;  %p2280_p1 = scmp.lt.s32.totalorder %s2278_s6, %s2272_s3 }
  0x20   : > { %2116 = vmatprep.subr.bf16.mxu0 %v2496_v39  ;;  %2068 = vmatprep.subr.bf16.mxu1 %v2501_v44 }
  0x21   : > { %179 = vperm.xlu1 %2271, %v150_v22   ;;  %176 = vperm.xlu0 %2270, %v149_v23   ;;  %p2281_p2 = por %p2280_p1, %p2279_p0 }
  0x23   : > { %p2282_p3 = pnand %p2281_p2, %p2275_p13 }
  0x25   : > { %185 = vperm.xlu1 %2271, %v152_v27   ;;  %182 = vperm.xlu0 %2270, %v151_v28  }
  0x29   : > { %191 = vperm.xlu1 %2271, %v154_v29   ;;  %188 = vperm.xlu0 %2270, %v153_v30  }
  0x2d   : > { %197 = vperm.xlu1 %2271, %v156_v33   ;;  %194 = vperm.xlu0 %2270, %v155_v34  }
  0x31   : > { %203 = vperm.xlu1 %2271, %v158_v40   ;;  %200 = vperm.xlu0 %2270, %v157_v41  }
  0x35   : > { %209 = vperm.xlu1 %2271, %v160_v47   ;;  %206 = vperm.xlu0 %2270, %v159_v48  }
  0x98   : > { %v171_v22 = vpop.permute.xlu1 %170  ;;  %v165_v23 = vpop.permute.xlu0 %164 }
  0x99   : > { %vm213_vm1 = vcmp.eq.s32.totalorder %v171_v22, %v2540_v21  ;;  %vm211_vm2 = vcmp.eq.s32.totalorder %v165_v23, %v2540_v21 }
  0x9a   : > { %v2545_v25 = vsel %vm213_vm1, 1.0, %v2337_v24  ;;  %v2548_v27 = vsel %vm211_vm2, 1.0, %v2337_v24 }
  0x9b   : > { %v275_v28 = vsel %vm267_vm0, %v2545_v25, 0  ;;  %v269_v29 = vsel %vm267_vm0, %v2548_v27, 0 }
  0x9c   : > { %v2554_v30 = vsub.f32 %v275_v28, %v275_v28  ;;  %v2556_v31 = vsub.f32 %v269_v29, %v269_v29  ;;  %v174_v32 = vpop.permute.xlu1 %173  ;;  %v168_v33 = vpop.permute.xlu0 %167 }
  0x9d   : > { %vm214_vm3 = vcmp.eq.s32.totalorder %v174_v32, %v2540_v21  ;;  %vm212_vm4 = vcmp.eq.s32.totalorder %v168_v33, %v2540_v21 }
  0x9e   : > { %v2561_v34 = vsel %vm214_vm3, 1.0, %v2337_v24  ;;  %v2564_v35 = vsel %vm212_vm4, 1.0, %v2337_v24  ;;  %v391_v36 = vand.u32 4294901760, %v2556_v31  ;;  %v411_v40 = vand.u32 4294901760, %v2554_v30 }
  0x9f   : > { %v278_v37 = vsel %vm267_vm0, %v2561_v34, 0  ;;  %v272_v38 = vsel %vm267_vm0, %v2564_v35, 0 }
  0xa0   : > { %v2572_v41 = vsub.f32 %v278_v37, %v278_v37  ;;  %v2574_v42 = vsub.f32 %v272_v38, %v272_v38  ;;  %v180_v43 = vpop.permute.xlu1 %179  ;;  %1947 = vmatprep.mubr.f32.mxu0 %v391_v36  ;;  %v177_v45 = vpop.permute.xlu0 %176  ;;  %v392_v46 = vsub.f32 %v2556_v31, %v391_v36  ;;  %v412_v55 = vsub.f32 %v2554_v30, %v411_v40 }
  0xa1   : > { %vm216_vm5 = vcmp.eq.s32.totalorder %v180_v43, %v2540_v21  ;;  %vm215_vm6 = vcmp.eq.s32.totalorder %v177_v45, %v2540_v21 }
  0xa2   : > { %v2580_v47 = vsel %vm216_vm5, 1.0, %v2337_v24  ;;  %v2583_v48 = vsel %vm215_vm6, 1.0, %v2337_v24  ;;  %v393_v49 = vand.u32 4294901760, %v392_v46  ;;  %v401_v50 = vand.u32 4294901760, %v2574_v42 }
  0xa3   : > { %v284_v51 = vsel %vm267_vm0, %v2580_v47, 0  ;;  %v281_v52 = vsel %vm267_vm0, %v2583_v48, 0  ;;  %v421_v54 = vand.u32 4294901760, %v2572_v41 }
  0xa4   : > { %v2592_v56 = vsub.f32 %v284_v51, %v284_v51  ;;  %v2594_v57 = vsub.f32 %v281_v52, %v281_v52  ;;  %v186_v59 = vpop.permute.xlu1 %185  ;;  %1827 = vmatprep.mubr.f32.mxu1 %v393_v49  ;;  %1948 = vmatmul.mubr.f32.vlgmr.msra.gmra.mrb[0].mxu0 %v401_v50  ;;  %v183_v60 = vpop.permute.xlu0 %182  ;;  %v402_v61 = vsub.f32 %v2574_v42, %v401_v50 }
  0xa5   : > { %vm218_vm7 = vcmp.eq.s32.totalorder %v186_v59, %v2540_v21  ;;  %vm217_vm8 = vcmp.eq.s32.totalorder %v183_v60, %v2540_v21  ;;  %1950 = vmatprep.mubr.f32.mxu0 %v411_v40  ;;  %2118 = vmatpush3.bf16.msra.mxu0 %v2496_v39  ;;  %v422_v62 = vsub.f32 %v2572_v41, %v421_v54  ;;  %v413_v39 = vand.u32 4294901760, %v412_v55 }
  0xa6   : > { %v2602_v0 = vsel %vm218_vm7, 1.0, %v2337_v24  ;;  %v2605_v1 = vsel %vm217_vm8, 1.0, %v2337_v24  ;;  %v403_v2 = vand.u32 4294901760, %v402_v61  ;;  %v431_v3 = vand.u32 4294901760, %v2594_v57  ;;  %2120 = vmatprep.subr.bf16.mxu0 %v2512_v53 }
  0xa7   : > { %v290_v4 = vsel %vm267_vm0, %v2602_v0, 0  ;;  %v287_v5 = vsel %vm267_vm0, %v2605_v1, 0  ;;  %v441_v7 = vand.u32 4294901760, %v2592_v56  ;;  %v423_v23 = vand.u32 4294901760, %v422_v62 }
  0xa8   : > { %v2614_v8 = vsub.f32 %v290_v4, %v290_v4  ;;  %v2616_v12 = vsub.f32 %v287_v5, %v287_v5  ;;  %v192_v13 = vpop.permute.xlu1 %191  ;;  %1828 = vmatmul.mubr.f32.vlgmr.msra.gmra.mrb[0].mxu1 %v403_v2  ;;  %1951 = vmatmul.mubr.f32.gmra.mrb[2].mxu0 %v421_v54  ;;  %v189_v20 = vpop.permute.xlu0 %188  ;;  %v432_v22 = vsub.f32 %v2594_v57, %v431_v3 }
  0xa9   : > { %vm220_vm9 = vcmp.eq.s32.totalorder %v192_v13, %v2540_v21  ;;  %2070 = vmatpush3.bf16.msra.mxu1 %v2501_v44  ;;  %vm219_vm10 = vcmp.eq.s32.totalorder %v189_v20, %v2540_v21  ;;  %1830 = vmatprep.mubr.f32.mxu1 %v413_v39  ;;  %v442_v28 = vsub.f32 %v2592_v56, %v441_v7 }
  0xaa   : > { %v2624_v29 = vsel %vm220_vm9, 1.0, %v2337_v24  ;;  %v2627_v32 = vsel %vm219_vm10, 1.0, %v2337_v24  ;;  %1953 = vmatprep.mubr.f32.mxu0 %v431_v3  ;;  %v433_v33 = vand.u32 4294901760, %v432_v22  ;;  %v451_v36 = vand.u32 4294901760, %v2616_v12  ;;  %2072 = vmatprep.subr.bf16.mxu1 %v2520_v58 }
  0xab   : > { %v296_v44 = vsel %vm267_vm0, %v2624_v29, 0  ;;  %v293_v37 = vsel %vm267_vm0, %v2627_v32, 0  ;;  %v461_v38 = vand.u32 4294901760, %v2614_v8  ;;  %2122 = vmatpush3.bf16.msra.mxu0 %v2512_v53  ;;  %v443_v50 = vand.u32 4294901760, %v442_v28 }
  0xac   : > { %v2637_v40 = vsub.f32 %v296_v44, %v296_v44  ;;  %v2639_v43 = vsub.f32 %v293_v37, %v293_v37  ;;  %v198_v45 = vpop.permute.xlu1 %197  ;;  %1831 = vmatmul.mubr.f32.gmra.mrb[2].mxu1 %v423_v23  ;;  %1954 = vmatmul.mubr.f32.gmra.mrb[4].mxu0 %v441_v7  ;;  %v195_v46 = vpop.permute.xlu0 %194  ;;  %v452_v49 = vsub.f32 %v2616_v12, %v451_v36 }
  0xad   : > { %vm222_vm11 = vcmp.eq.s32.totalorder %v198_v45, %v2540_v21  ;;  %vm221_vm12 = vcmp.eq.s32.totalorder %v195_v46, %v2540_v21  ;;  %1833 = vmatprep.mubr.f32.mxu1 %v433_v33  ;;  %1956 = vmatprep.mubr.f32.mxu0 %v451_v36  ;;  %v462_v51 = vsub.f32 %v2614_v8, %v461_v38 }
  0xae   : > { %v2646_v53 = vsel %vm222_vm11, 1.0, %v2337_v24  ;;  %v2649_v52 = vsel %vm221_vm12, 1.0, %v2337_v24  ;;  %2074 = vmatpush3.bf16.msra.mxu1 %v2520_v58  ;;  %v453_v54 = vand.u32 4294901760, %v452_v49  ;;  %v471_v55 = vand.u32 4294901760, %v2639_v43  ;;  %2124 = vmatprep.subr.bf16.mxu0 %v2522_v63 }
  0xaf   : > { %v302_v59 = vsel %vm267_vm0, %v2646_v53, 0  ;;  %v299_v60 = vsel %vm267_vm0, %v2649_v52, 0  ;;  %v481_v61 = vand.u32 4294901760, %v2637_v40  ;;  %2076 = vmatprep.subr.bf16.mxu1 %v2526_v6  ;;  %2126 = vmatpush3.bf16.msra.mxu0 %v2522_v63  ;;  %v463_v5 = vand.u32 4294901760, %v462_v51 }
  0xb0   : > { %v2661_v62 = vsub.f32 %v302_v59, %v302_v59  ;;  %v2663_v58 = vsub.f32 %v299_v60, %v299_v60  ;;  %v204_v2 = vpop.permute.xlu1 %203  ;;  %1834 = vmatmul.mubr.f32.gmra.mrb[4].mxu1 %v443_v50  ;;  %1957 = vmatmul.mubr.f32.gmra.mrb[6].mxu0 %v461_v38  ;;  %v201_v3 = vpop.permute.xlu0 %200  ;;  %v472_v4 = vsub.f32 %v2639_v43, %v471_v55 }
  0xb1   : > { %vm224_vm13 = vcmp.eq.s32.totalorder %v204_v2, %v2540_v21  ;;  %vm223_vm14 = vcmp.eq.s32.totalorder %v201_v3, %v2540_v21  ;;  %1836 = vmatprep.mubr.f32.mxu1 %v453_v54  ;;  %1959 = vmatprep.mubr.f32.mxu0 %v471_v55  ;;  %v482_v39 = vsub.f32 %v2637_v40, %v481_v61 }
  0xb2   : > { %v2670_v63 = vsel %vm224_vm13, 1.0, %v2337_v24  ;;  %v2673_v7 = vsel %vm223_vm14, 1.0, %v2337_v24  ;;  %v473_v13 = vand.u32 4294901760, %v472_v4  ;;  %v491_v20 = vand.u32 4294901760, %v2663_v58  ;;  %2078 = vmatpush3.bf16.msra.mxu1 %v2526_v6  ;;  %2128 = vmatprep.subr.bf16.mxu0 %v2528_v11 }
  0xb3   : > { %v308_v22 = vsel %vm267_vm0, %v2670_v63, 0  ;;  %v305_v23 = vsel %vm267_vm0, %v2673_v7, 0  ;;  %v501_v28 = vand.u32 4294901760, %v2661_v62  ;;  %2080 = vmatprep.subr.bf16.mxu1 %v2530_v14  ;;  %2130 = vmatpush3.bf16.msra.mxu0 %v2528_v11  ;;  %v483_v38 = vand.u32 4294901760, %v482_v39 }
  0xb4   : > { %v2685_v33 = vsub.f32 %v308_v22, %v308_v22  ;;  %v2687_v36 = vsub.f32 %v305_v23, %v305_v23  ;;  %v210_v44 = vpop.permute.xlu1 %209  ;;  %1837 = vmatmul.mubr.f32.gmra.mrb[6].mxu1 %v463_v5  ;;  %1960 = vmatmul.mubr.f32.gmra.mrb[8].mxu0 %v481_v61  ;;  %v207_v6 = vpop.permute.xlu0 %206  ;;  %v492_v37 = vsub.f32 %v2663_v58, %v491_v20 }
  0xb5   : > { %vm226_vm15 = vcmp.eq.s32.totalorder %v210_v44, %v2540_v21  ;;  %vm225_vm1 = vcmp.eq.s32.totalorder %v207_v6, %v2540_v21  ;;  %1839 = vmatprep.mubr.f32.mxu1 %v473_v13  ;;  %1962 = vmatprep.mubr.f32.mxu0 %v491_v20  ;;  %v502_v45 = vsub.f32 %v2661_v62, %v501_v28 }
  0xb6   : > { %v2694_v11 = vsel %vm226_vm15, 1.0, %v2337_v24  ;;  %v2697_v46 = vsel %vm225_vm1, 1.0, %v2337_v24  ;;  %v493_v49 = vand.u32 4294901760, %v492_v37  ;;  %v511_v50 = vand.u32 4294901760, %v2687_v36  ;;  %2082 = vmatpush3.bf16.msra.mxu1 %v2530_v14  ;;  %2132 = vmatprep.subr.bf16.mxu0 %v2423_v9 }
  0xb7   : > { %v314_v21 = vsel %vm267_vm0, %v2694_v11, 0  ;;  %v311_v51 = vsel %vm267_vm0, %v2697_v46, 0  ;;  %v521_v54 = vand.u32 4294901760, %v2685_v33  ;;  %2084 = vmatprep.subr.bf16.mxu1 %v2532_v15  ;;  %v503_v59 = vand.u32 4294901760, %v502_v45 }
  0xb8   : > { %v2708_v55 = vsub.f32 %v314_v21, %v314_v21  ;;  %v2710_v24 = vsub.f32 %v311_v51, %v311_v51  ;;  %1840 = vmatmul.mubr.f32.gmra.mrb[8].mxu1 %v483_v38  ;;  %1963 = vmatmul.mubr.f32.gmra.mrb[10].mxu0 %v501_v28  ;;  %v512_v14 = vsub.f32 %v2687_v36, %v511_v50 }
  0xb9   : > { %1842 = vmatprep.mubr.f32.mxu1 %v493_v49  ;;  %1965 = vmatprep.mubr.f32.mxu0 %v511_v50  ;;  %v522_v2 = vsub.f32 %v2685_v33, %v521_v54 }
  0xba   : > { %v513_v60 = vand.u32 4294901760, %v512_v14  ;;  %v531_v61 = vand.u32 4294901760, %v2710_v24  ;;  %v541_v3 = vand.u32 4294901760, %v2708_v55 }
  0xbb   : > { %v523_v5 = vand.u32 4294901760, %v522_v2 }
  0xbc   : > { %1843 = vmatmul.mubr.f32.gmra.mrb[10].mxu1 %v503_v59  ;;  %1966 = vmatmul.mubr.f32.gmra.mrb[12].mxu0 %v521_v54  ;;  %v532_v4 = vsub.f32 %v2710_v24, %v531_v61  ;;  %v542_v13 = vsub.f32 %v2708_v55, %v541_v3 }
  0xbd   : > { %1845 = vmatprep.mubr.f32.mxu1 %v513_v60  ;;  %1968 = vmatprep.mubr.f32.mxu0 %v531_v61 }
  0xbe   : > { %v533_v39 = vand.u32 4294901760, %v532_v4  ;;  %v543_v20 = vand.u32 4294901760, %v542_v13 }
  0xc0   : > { %1846 = vmatmul.mubr.f32.gmra.mrb[12].mxu1 %v523_v5  ;;  %1969 = vmatmul.mubr.f32.gmra.mrb[14].mxu0 %v541_v3 }
  0xc1   : > { %1848 = vmatprep.mubr.f32.mxu1 %v533_v39  ;;  %1987 = vmatprep.mubr.msk.f32.mxu0 %vm267_vm0, %v2548_v27 }
  0xc4   : > { %1849 = vmatmul.mubr.f32.gmra.mrb[14].mxu1 %v543_v20  ;;  %1988 = vmatmul.mubr.msk.f32.vlgmr.msra.gmra.mrb[0].mxu0 %vm267_vm0, %v2564_v35 }
  0xc5   : > { %1867 = vmatprep.mubr.msk.f32.mxu1 %vm267_vm0, %v2548_v27  ;;  %1990 = vmatprep.mubr.msk.f32.mxu0 %vm267_vm0, %v2545_v25 }
  0xc6   : > { %2134 = vmatpush3.bf16.msra.mxu0 %v2423_v9 }
  0xc7   : > { %2136 = vmatprep.subr.bf16.mxu0 %v2429_v10 }
  0xc8   : > { %1868 = vmatmul.mubr.msk.f32.vlgmr.msra.gmra.mrb[0].mxu1 %vm267_vm0, %v2564_v35  ;;  %1991 = vmatmul.mubr.msk.f32.gmra.mrb[2].mxu0 %vm267_vm0, %v2561_v34 }
  0xc9   : > { %2086 = vmatpush3.bf16.msra.mxu1 %v2532_v15  ;;  %1870 = vmatprep.mubr.msk.f32.mxu1 %vm267_vm0, %v2545_v25 }
  0xca   : > { %1993 = vmatprep.mubr.msk.f32.mxu0 %vm267_vm0, %v2583_v48  ;;  %2088 = vmatprep.subr.bf16.mxu1 %v2534_v16 }
  0xcb   : > { %2138 = vmatpush3.bf16.msra.mxu0 %v2429_v10 }
  0xcc   : > { %1871 = vmatmul.mubr.msk.f32.gmra.mrb[2].mxu1 %vm267_vm0, %v2561_v34  ;;  %1994 = vmatmul.mubr.msk.f32.gmra.mrb[4].mxu0 %vm267_vm0, %v2580_v47 }
  0xcd   : > { %1873 = vmatprep.mubr.msk.f32.mxu1 %vm267_vm0, %v2583_v48  ;;  %1996 = vmatprep.mubr.msk.f32.mxu0 %vm267_vm0, %v2605_v1 }
  0xce   : > { %2090 = vmatpush3.bf16.msra.mxu1 %v2534_v16  ;;  %2140 = vmatprep.subr.bf16.mxu0 %v2462_v19 }
  0xcf   : > { %2092 = vmatprep.subr.bf16.mxu1 %v2536_v17  ;;  %2142 = vmatpush3.bf16.msra.mxu0 %v2462_v19 }
  0xd0   : > { %1874 = vmatmul.mubr.msk.f32.gmra.mrb[4].mxu1 %vm267_vm0, %v2580_v47  ;;  %1997 = vmatmul.mubr.msk.f32.gmra.mrb[6].mxu0 %vm267_vm0, %v2602_v0 }
  0xd1   : > { %1876 = vmatprep.mubr.msk.f32.mxu1 %vm267_vm0, %v2605_v1  ;;  %1999 = vmatprep.mubr.msk.f32.mxu0 %vm267_vm0, %v2627_v32 }
  0xd2   : > { %2094 = vmatpush3.bf16.msra.mxu1 %v2536_v17  ;;  %2144 = vmatprep.subr.bf16.mxu0 %v2484_v26 }
  0xd3   : > { %2096 = vmatprep.subr.bf16.mxu1 %v2538_v18  ;;  %2146 = vmatpush3.bf16.msra.mxu0 %v2484_v26 }
  0xd4   : > { %1877 = vmatmul.mubr.msk.f32.gmra.mrb[6].mxu1 %vm267_vm0, %v2602_v0  ;;  %2000 = vmatmul.mubr.msk.f32.gmra.mrb[8].mxu0 %vm267_vm0, %v2624_v29 }
  0xd5   : > { %1879 = vmatprep.mubr.msk.f32.mxu1 %vm267_vm0, %v2627_v32  ;;  %2002 = vmatprep.mubr.msk.f32.mxu0 %vm267_vm0, %v2649_v52 }
  0xd6   : > { %2098 = vmatpush3.bf16.msra.mxu1 %v2538_v18 }
  0xd8   : > { %1880 = vmatmul.mubr.msk.f32.gmra.mrb[8].mxu1 %vm267_vm0, %v2624_v29  ;;  %2003 = vmatmul.mubr.msk.f32.gmra.mrb[10].mxu0 %vm267_vm0, %v2646_v53 }
  0xd9   : > { %1882 = vmatprep.mubr.msk.f32.mxu1 %vm267_vm0, %v2649_v52  ;;  %2005 = vmatprep.mubr.msk.f32.mxu0 %vm267_vm0, %v2673_v7 }
  0xdc   : > { %1883 = vmatmul.mubr.msk.f32.gmra.mrb[10].mxu1 %vm267_vm0, %v2646_v53  ;;  %2006 = vmatmul.mubr.msk.f32.gmra.mrb[12].mxu0 %vm267_vm0, %v2670_v63 }
  0xdd   : > { %1885 = vmatprep.mubr.msk.f32.mxu1 %vm267_vm0, %v2673_v7  ;;  %2008 = vmatprep.mubr.msk.f32.mxu0 %vm267_vm0, %v2697_v46 }
  0xe0   : > { %1886 = vmatmul.mubr.msk.f32.gmra.mrb[12].mxu1 %vm267_vm0, %v2670_v63  ;;  %2009 = vmatmul.mubr.msk.f32.gmra.mrb[14].mxu0 %vm267_vm0, %v2694_v11 }
  0xe1   : > { %1888 = vmatprep.mubr.msk.f32.mxu1 %vm267_vm0, %v2697_v46  ;;  %2027 = vmatprep.mubr.msk.f32.mxu0 %vm267_vm0, %v2548_v27 }
  0xe4   : > { %1889 = vmatmul.mubr.msk.f32.gmra.mrb[14].mxu1 %vm267_vm0, %v2694_v11  ;;  %2028 = vmatmul.mubr.msk.f32.vlgmr.msra.gmra.mrb[0].mxu0 %vm267_vm0, %v2564_v35 }
  0xe5   : > { %1907 = vmatprep.mubr.f32.mxu1 %v2556_v31  ;;  %2030 = vmatprep.mubr.msk.f32.mxu0 %vm267_vm0, %v2545_v25 }
  0xe8   : > { %1908 = vmatmul.mubr.f32.vlgmr.msra.gmra.mrb[0].mxu1 %v2574_v42  ;;  %2031 = vmatmul.mubr.msk.f32.gmra.mrb[2].mxu0 %vm267_vm0, %v2561_v34 }
  0xe9   : > { %1910 = vmatprep.mubr.f32.mxu1 %v2554_v30  ;;  %2033 = vmatprep.mubr.msk.f32.mxu0 %vm267_vm0, %v2583_v48 }
  0xec   : > { %1911 = vmatmul.mubr.f32.gmra.mrb[2].mxu1 %v2572_v41  ;;  %2034 = vmatmul.mubr.msk.f32.gmra.mrb[4].mxu0 %vm267_vm0, %v2580_v47 }
  0xed   : > { %1913 = vmatprep.mubr.f32.mxu1 %v2594_v57  ;;  %2036 = vmatprep.mubr.msk.f32.mxu0 %vm267_vm0, %v2605_v1 }
  0xf0   : > { %1914 = vmatmul.mubr.f32.gmra.mrb[4].mxu1 %v2592_v56  ;;  %2037 = vmatmul.mubr.msk.f32.gmra.mrb[6].mxu0 %vm267_vm0, %v2602_v0 }
  0xf1   : > { %1916 = vmatprep.mubr.f32.mxu1 %v2616_v12  ;;  %2039 = vmatprep.mubr.msk.f32.mxu0 %vm267_vm0, %v2627_v32 }
  0xf4   : > { %1917 = vmatmul.mubr.f32.gmra.mrb[6].mxu1 %v2614_v8  ;;  %2040 = vmatmul.mubr.msk.f32.gmra.mrb[8].mxu0 %vm267_vm0, %v2624_v29 }
  0xf5   : > { %1919 = vmatprep.mubr.f32.mxu1 %v2639_v43  ;;  %2042 = vmatprep.mubr.msk.f32.mxu0 %vm267_vm0, %v2649_v52 }
  0xf8   : > { %1920 = vmatmul.mubr.f32.gmra.mrb[8].mxu1 %v2637_v40  ;;  %2043 = vmatmul.mubr.msk.f32.gmra.mrb[10].mxu0 %vm267_vm0, %v2646_v53 }
  0xf9   : > { %1922 = vmatprep.mubr.f32.mxu1 %v2663_v58  ;;  %2045 = vmatprep.mubr.msk.f32.mxu0 %vm267_vm0, %v2673_v7 }
  0xfc   : > { %1923 = vmatmul.mubr.f32.gmra.mrb[10].mxu1 %v2661_v62  ;;  %2046 = vmatmul.mubr.msk.f32.gmra.mrb[12].mxu0 %vm267_vm0, %v2670_v63 }
  0xfd   : > { %1925 = vmatprep.mubr.f32.mxu1 %v2687_v36  ;;  %2048 = vmatprep.mubr.msk.f32.mxu0 %vm267_vm0, %v2697_v46 }
 0x100   : > { %1926 = vmatmul.mubr.f32.gmra.mrb[12].mxu1 %v2685_v33  ;;  %2049 = vmatmul.mubr.msk.f32.gmra.mrb[14].mxu0 %vm267_vm0, %v2694_v11 }
 0x101   : > { %1928 = vmatprep.mubr.f32.mxu1 %v2710_v24 }
 0x104   : > { %1929 = vmatmul.mubr.f32.gmra.mrb[14].mxu1 %v2708_v55 }
 0x1b7   : > { %v2029_v9 = vpop.f32.mrb[0].mxu0 }
 0x1b8   : > { %v1404_v10 = vpop.f32.mrb[1].mxu0 }
 0x1bb   : > { %v1909_v19 = vpop.f32.mrb[0].mxu1  ;;  %v2032_v26 = vpop.f32.mrb[2].mxu0 }
 0x1bc   : > { %v2147_v15 = vadd.f32 %v2029_v9, %v1909_v19  ;;  %v834_v16 = vpop.f32.mrb[1].mxu1  ;;  %v1416_v17 = vpop.f32.mrb[3].mxu0 }
 0x1bd   : > { %v2148_v18 = vadd.f32 %v1404_v10, %v834_v16 }
 0x1be   : > { %1499 = vst [vmem:[%s2847_s25 + $0x8] sm:$0xff] %v2147_v15 }
 0x1bf   : > { %1498 = vst [vmem:[%s2847_s25] sm:$0xff] %v2148_v18  ;;  %v1912_v25 = vpop.f32.mrb[2].mxu1  ;;  %v2035_v27 = vpop.f32.mrb[4].mxu0 }
 0x1c0   : > { %v2149_v30 = vadd.f32 %v2032_v26, %v1912_v25  ;;  %v848_v31 = vpop.f32.mrb[3].mxu1  ;;  %v1428_v34 = vpop.f32.mrb[5].mxu0 }
 0x1c1   : > { %v2150_v35 = vadd.f32 %v1416_v17, %v848_v31 }
 0x1c2   : > { %1501 = vst [vmem:[%s2847_s25 + $0x18] sm:$0xff] %v2149_v30 }
 0x1c3   : > { %1500 = vst [vmem:[%s2847_s25 + $0x10] sm:$0xff] %v2150_v35  ;;  %v1915_v41 = vpop.f32.mrb[4].mxu1  ;;  %v2038_v42 = vpop.f32.mrb[6].mxu0 }
 0x1c4   : > { %v2151_v47 = vadd.f32 %v2035_v27, %v1915_v41  ;;  %v862_v48 = vpop.f32.mrb[5].mxu1  ;;  %v1440_v56 = vpop.f32.mrb[7].mxu0 }
 0x1c5   : > { %v2152_v57 = vadd.f32 %v1428_v34, %v862_v48 }
 0x1c6   : > { %1503 = vst [vmem:[%s2847_s25 + $0x28] sm:$0xff] %v2151_v47 }
 0x1c7   : > { %1502 = vst [vmem:[%s2847_s25 + $0x20] sm:$0xff] %v2152_v57  ;;  %v1918_v0 = vpop.f32.mrb[6].mxu1  ;;  %v2041_v1 = vpop.f32.mrb[8].mxu0 }
 0x1c8   : > { %v2153_v8 = vadd.f32 %v2038_v42, %v1918_v0  ;;  %v876_v12 = vpop.f32.mrb[7].mxu1  ;;  %v1452_v29 = vpop.f32.mrb[9].mxu0 }
 0x1c9   : > { %v2154_v32 = vadd.f32 %v1440_v56, %v876_v12 }
 0x1ca   : > { %1505 = vst [vmem:[%s2847_s25 + $0x38] sm:$0xff] %v2153_v8 }
 0x1cb   : > { %1504 = vst [vmem:[%s2847_s25 + $0x30] sm:$0xff] %v2154_v32  ;;  %v1921_v40 = vpop.f32.mrb[8].mxu1  ;;  %v2044_v43 = vpop.f32.mrb[10].mxu0 }
 0x1cc   : > { %v2155_v53 = vadd.f32 %v2041_v1, %v1921_v40  ;;  %v890_v52 = vpop.f32.mrb[9].mxu1  ;;  %v1464_v62 = vpop.f32.mrb[11].mxu0 }
 0x1cd   : > { %v2156_v58 = vadd.f32 %v1452_v29, %v890_v52 }
 0x1ce   : > { %1507 = vst [vmem:[%s2847_s25 + $0x48] sm:$0xff] %v2155_v53 }
 0x1cf   : > { %1506 = vst [vmem:[%s2847_s25 + $0x40] sm:$0xff] %v2156_v58  ;;  %v1924_v63 = vpop.f32.mrb[10].mxu1  ;;  %v2047_v7 = vpop.f32.mrb[12].mxu0 }
 0x1d0   : > { %v2157_v22 = vadd.f32 %v2044_v43, %v1924_v63  ;;  %v904_v23 = vpop.f32.mrb[11].mxu1  ;;  %v1476_v28 = vpop.f32.mrb[13].mxu0 }
 0x1d1   : > { %v2158_v33 = vadd.f32 %v1464_v62, %v904_v23 }
 0x1d2   : > { %1509 = vst [vmem:[%s2847_s25 + $0x58] sm:$0xff] %v2157_v22 }
 0x1d3   : > { %1508 = vst [vmem:[%s2847_s25 + $0x50] sm:$0xff] %v2158_v33  ;;  %v1927_v36 = vpop.f32.mrb[12].mxu1  ;;  %v2050_v44 = vpop.f32.mrb[14].mxu0 }
 0x1d4   : > { %v2159_v6 = vadd.f32 %v2047_v7, %v1927_v36  ;;  %v918_v37 = vpop.f32.mrb[13].mxu1  ;;  %v1488_v38 = vpop.f32.mrb[15].mxu0 }
 0x1d5   : > { %v2160_v45 = vadd.f32 %v1476_v28, %v918_v37 }
 0x1d6   : > { %1511 = vst [vmem:[%s2847_s25 + $0x68] sm:$0xff] %v2159_v6 }
 0x1d7   : > { %1510 = vst [vmem:[%s2847_s25 + $0x60] sm:$0xff] %v2160_v45  ;;  %v1930_v11 = vpop.f32.mrb[14].mxu1 }
 0x1d8   : > { %v2161_v46 = vadd.f32 %v2050_v44, %v1930_v11  ;;  %v932_v49 = vpop.f32.mrb[15].mxu1 }
 0x1d9   : > { %v2162_v50 = vadd.f32 %v1488_v38, %v932_v49 }
 0x1da   : > { %1513 = vst [vmem:[%s2847_s25 + $0x78] sm:$0xff] %v2161_v46 }
 0x1db   : > { %1512 = vst [vmem:[%s2847_s25 + $0x70] sm:$0xff] %v2162_v50 }
 0x1dc   : > { %2285 = shalt.err (!%p2282_p3)
}
 0x1dd   : > { %s2286_s7 = scalar_lea.hbm %s2868_s30, 2048  ;;  %s2290_s16 = scalar_lea.hbm %s2919_s2, 4096 }
 0x1de   : > { %p2287_p4 = scmp.ne.s32.totalorder %s2868_s30, %s2286_s7  ;;  %p2291_p9 = scmp.lt.u32.totalorder %s2868_s30, %s2919_s2 }
 0x1df   : > { %p2292_p10 = scmp.lt.u32.totalorder %s2290_s16, %s2286_s7  ;;  %p2294_p12 = scmp.lt.u32.totalorder %s2286_s7, %s2868_s30 }
 0x1e0   : > { %p2288_p7 = pnand %p2287_p4, %p2394_p5 }
 0x1e1   : > { %p2293_p11 = por %p2292_p10, %p2291_p9 }
 0x1e2   : > { %p2289_p8 = pneg %p2288_p7 }
 0x1e3   : > { %p2295_p13 = por %p2294_p12, %p2293_p11 }
 0x1e5   : > { %p2296_p0 = pnand %p2295_p13, %p2289_p8 }
 0x1e7   : > { %2299 = shalt.err (!%p2296_p0)
}
 0x1e8   : > { %s2339_s22 = smov 128   ;;  %s2340_s23 = smov 8  }
 0x1e9   : > { %2227 = dma.vmem_to_hbm [thread:$0]  (%p2394_p5), %s2870_s27, 2048, %s2868_s30, %s2876_s13, %s2339_s22, %s2339_s22, %s2340_s23  }
 0x1ea PF: > { %p2233_p1 = scmp.ge.s32.totalorder %s2334_s12, 2  ;;  %s1543_s24 = sand.u32 1, %s2322_s9  }
 0x1eb   : > { %s1544_s25 = scalar_lea.sflag [#allocation3], %s1543_s24 }
 0x1ec   : > { %p2230_p2 = pnand %p2233_p1, %p2398_p6 }
 0x1ee   : > { %2317 = dma.done.wait (!%p2230_p2), %s1544_s25, 2048  }
 0x1ef   : > { %2319 = vsyncadd (!%p2230_p2), %s1544_s25, 4294965248  ;;  %p12_p3 = scmp.ge.s32.totalorder %s2381_s15, 4   ;;  %s2922_s9 = smov %s2326_s10 }
 0x1f0   : > { %s2923_s10 = smov %s2330_s11  ;;  %s2924_s11 = smov %s2392_s18 }
 0x1f1   : > { %s2925_s12 = smov %s2381_s15  ;;  %14 = sbr.rel (!%p12_p3) target bundleno = 3 (0x3), region = 63 }
 0x1f8   :  { %1549 = vsyncpa [#allocation3], 1 }
 0x1f9   :  { %1551 = vsyncpa [#allocation3 + $0x1], 1 }

// kernel: tpu_custom_call.1
= control target key start
LH: loop header
LB: loop body
LE: loop exit
PB: predicated region body
PF: predicated region fallthrough
CT: control target
= control target key end

     0   :  { %7 = vsyncpa [#allocation3], 0  ;;  %s2917_s0 = inlined_call_operand.vmem [shape: s32[256,1], index: 0, kind: input, shape index: {}]   ;;  %s2918_s1 = inlined_call_operand.vmem [shape: f32[64,128], index: 1, kind: input, shape index: {}]   ;;  %s2919_s2 = inlined_call_operand.hbm [shape: f32[256,128], index: 2, kind: output, shape index: {}]  }
   0x1   :  { %9 = vsyncpa [#allocation3 + $0x1], 0  ;;  %s2356_s9 = smov 0   ;;  %s2358_s10 = smov 0  }
   0x2   :  { %s2360_s11 = smov 0   ;;  %s2362_s12 = smov 0  }
   0x3 LB: > { %s2377_s13 = sadd.s32 4294967295, %s2334_s12   ;;  %s1590_s14 = sadd.s32 4294967294, %s2334_s12   ;;  %s2334_s12 = sphi %s2362_s12, %s2925_s12   ;;  %s2330_s11 = sphi %s2360_s11, %s2924_s11   ;;  %s2326_s10 = sphi %s2358_s10, %s2923_s10   ;;  %s2322_s9 = sphi %s2356_s9, %s2922_s9  }
   0x4   : > { %s2381_s15 = sadd.s32 1, %s2334_s12   ;;  %s69_s16 = sadd.s32 1, %s2330_s11 }
   0x5   : > { %s66_s17 = ssub.s32 %s2334_s12, %s2381_s15  ;;  %p79_p0 = scmp.ne.s32.totalorder %s2330_s11, %s2326_s10 }
   0x6   : > { %p67_p1 = scmp.eq.s32.totalorder %s66_s17, 0  ;;  %p80_p2 = scmp.eq.s32.totalorder %s2377_s13, 1 }
   0x7   : > { %p85_p3 = scmp.ne.s32.totalorder %s2326_s10, %s2322_s9  ;;  %p86_p4 = scmp.eq.s32.totalorder %s1590_s14, 1 }
   0x8   : > { %s2392_s18 = scalar_select %p67_p1, %s2330_s11, %s69_s16  }
   0x9   : > { %p2394_p5 = por %p80_p2, %p79_p0  ;;  %p2398_p6 = por %p86_p4, %p85_p3 }
   0xa   : > { %p1593_p7 = scmp.ge.s32.totalorder %s2334_s12, 1  ;;  %p116_p8 = scmp.lt.s32.totalorder %s2334_s12, 3 }
   0xc   : > { %p117_p9 = pnand %p1593_p7, %p116_p8 }
   0xd   : > { %s1595_s21 = sshll.u32 (!%p117_p9), %s2377_s13, 4  ;;  %v259_v0 = vld [vmem:[%s2918_s1] sm:$0xff] (!%p117_p9)  ;;  %v260_v1 = vld [vmem:[%s2918_s1 + $0x8] sm:$0xff] (!%p117_p9)  ;;  %v2414_v2 = vld [vmem:[%s2918_s1 + $0x10] sm:$0xff] (!%p117_p9)  ;;  %v2336_v3 = vmov (!%p117_p9), 0   ;;  %vm267_vm0 = vcmask (!%p117_p9), 523264  }
   0xe   : > { %120 = sbr.rel (%p117_p9) target bundleno = 490 (0x1ea), region = 28  ;;  %2271 = vset.pattern.permute.xlu1 (!%p117_p9), %v2336_v3  ;;  %2270 = vset.pattern.permute.xlu0 (!%p117_p9), %v2336_v3  ;;  %p139_p10 = scmp.lt.s32.totalorder (!%p117_p9), %s1595_s21, 31  ;;  %v317_v4 = vand.u32 (!%p117_p9), 4294901760, %v259_v0  ;;  %v320_v5 = vand.u32 (!%p117_p9), 4294901760, %v260_v1  ;;  %v2419_v6 = vld [vmem:[%s2918_s1 + $0x18] sm:$0xff] (!%p117_p9)  ;;  %v323_v7 = vand.u32 (!%p117_p9), 4294901760, %v2414_v2 }
   0xf   : > { %v326_v8 = vand.u32 (!%p117_p9), 4294901760, %v2419_v6  ;;  %v2443_v11 = vld [vmem:[%s2918_s1 + $0x20] sm:$0xff] (!%p117_p9)  ;;  %v2448_v12 = vld [vmem:[%s2918_s1 + $0x28] sm:$0xff] (!%p117_p9)  ;;  %v2471_v20 = vld [vmem:[%s2918_s1 + $0x30] sm:$0xff] (!%p117_p9)  ;;  %s135_s23 = sand.u32 (!%p117_p9), 1, %s2326_s10   ;;  %s1666_s26 = sshll.u32 (!%p117_p9), %s2377_s13, 11 }
  0x10   : > { %v2423_v9 = vpack.c.bf16 (!%p117_p9), %v320_v5, %v317_v4  ;;  %v329_v15 = vand.u32 (!%p117_p9), 4294901760, %v2443_v11  ;;  %v332_v16 = vand.u32 (!%p117_p9), 4294901760, %v2448_v12  ;;  %v2476_v21 = vld [vmem:[%s2918_s1 + $0x38] sm:$0xff] (!%p117_p9)  ;;  %v335_v24 = vand.u32 (!%p117_p9), 4294901760, %v2471_v20  ;;  %s1594_s24 = sshll.u32 (!%p117_p9), %s135_s23, 7  ;;  %s2876_s13 = scalar_lea.sflag (!%p117_p9), [#allocation3], %s135_s23 }
  0x11   : > { %v2429_v10 = vpack.c.bf16 (!%p117_p9), %v326_v8, %v323_v7  ;;  %v338_v25 = vand.u32 (!%p117_p9), 4294901760, %v2476_v21  ;;  %v551_v31 = vsub.f32 (!%p117_p9), %v259_v0, %v317_v4  ;;  %v558_v32 = vsub.f32 (!%p117_p9), %v260_v1, %v320_v5  ;;  %s2847_s25 = scalar_lea.vmem (!%p117_p9), [#allocation2], %s1594_s24  ;;  %s2338_s4 = smov (!%p117_p9), [#allocation2]  }
  0x12   : > { %2100 = vmatprep.subr.bf16.mxu0 (!%p117_p9), %v2423_v9  ;;  %2052 = vmatprep.subr.bf16.mxu1 (!%p117_p9), %v2423_v9  ;;  %v2462_v19 = vpack.c.bf16 (!%p117_p9), %v332_v16, %v329_v15  ;;  %v565_v45 = vsub.f32 (!%p117_p9), %v2414_v2, %v323_v7  ;;  %v572_v46 = vsub.f32 (!%p117_p9), %v2419_v6, %v326_v8  ;;  %s1528_s27 = sshll.u32 (!%p117_p9), %s2847_s25, 4  ;;  %s2870_s27 = int_to_ptr.vmem [resolvable:$true] %s1528_s27 }
  0x13   : > { %2102 = vmatpush3.bf16.msra.mxu0 (!%p117_p9), %v2423_v9  ;;  %2054 = vmatpush3.bf16.msra.mxu1 (!%p117_p9), %v2423_v9  ;;  %v2484_v26 = vpack.c.bf16 (!%p117_p9), %v338_v25, %v335_v24  ;;  %v552_v35 = vand.u32 (!%p117_p9), 4294901760, %v551_v31  ;;  %v559_v36 = vand.u32 (!%p117_p9), 4294901760, %v558_v32  ;;  %v579_v56 = vsub.f32 (!%p117_p9), %v2443_v11, %v329_v15  ;;  %s2272_s3 = scalar_lea.vmem (!%p117_p9), %s2870_s27, 2048 }
  0x14   : > { %2104 = vmatprep.subr.bf16.mxu0 (!%p117_p9), %v2429_v10  ;;  %2056 = vmatprep.subr.bf16.mxu1 (!%p117_p9), %v2429_v10  ;;  %v566_v49 = vand.u32 (!%p117_p9), 4294901760, %v565_v45  ;;  %v573_v50 = vand.u32 (!%p117_p9), 4294901760, %v572_v46  ;;  %v586_v57 = vsub.f32 (!%p117_p9), %v2448_v12, %v332_v16  ;;  %v593_v0 = vsub.f32 (!%p117_p9), %v2471_v20, %v335_v24  ;;  %p2273_p11 = scmp.ne.s32.totalorder (!%p117_p9), %s2870_s27, %s2272_s3 }
  0x15   : > { %s2927_s21 = smov (!%p139_p10, %s1595_s21), 31  ;;  %v553_v37 = vsub.f32 %v551_v31, %v552_v35  ;;  %v560_v38 = vsub.f32 %v558_v32, %v559_v36  ;;  %v2496_v39 = vpack.c.bf16 %v559_v36, %v552_v35  ;;  %v580_v59 = vand.u32 4294901760, %v579_v56 }
  0x16   : > { %s1596_s30 = sshll.u32 %s2927_s21, 3  ;;  %v567_v51 = vsub.f32 %v565_v45, %v566_v49  ;;  %v574_v52 = vsub.f32 %v572_v46, %v573_v50  ;;  %v2512_v53 = vpack.c.bf16 %v573_v50, %v566_v49  ;;  %v587_v60 = vand.u32 4294901760, %v586_v57  ;;  %p2274_p12 = pnand %p2273_p11, %p2394_p5 }
  0x17   : > { %s2436_s5 = scalar_lea.vmem %s2917_s0, %s1596_s30  ;;  %2106 = vmatpush3.bf16.msra.mxu0 %v2429_v10  ;;  %2058 = vmatpush3.bf16.msra.mxu1 %v2429_v10  ;;  %v554_v42 = vand.u32 4294901760, %v553_v37  ;;  %v561_v43 = vand.u32 4294901760, %v560_v38  ;;  %v581_v61 = vsub.f32 %v579_v56, %v580_v59  ;;  %v600_v1 = vsub.f32 %v2476_v21, %v338_v25  ;;  %s2868_s30 = scalar_lea.hbm %s2919_s2, %s1666_s26 }
  0x18   : > { %v147_v13 = vld [vmem:[%s2436_s5 + $0x10] sm:$0xff]  ;;  %v145_v14 = vld [vmem:[%s2436_s5] sm:$0xff]  ;;  %v148_v17 = vld [vmem:[%s2436_s5 + $0x18] sm:$0xff]  ;;  %2108 = vmatprep.subr.bf16.mxu0 %v2462_v19  ;;  %2060 = vmatprep.subr.bf16.mxu1 %v2462_v19  ;;  %v568_v54 = vand.u32 4294901760, %v567_v51  ;;  %v575_v55 = vand.u32 4294901760, %v574_v52  ;;  %v588_v62 = vsub.f32 %v586_v57, %v587_v60  ;;  %v2522_v63 = vpack.c.bf16 %v587_v60, %v580_v59  ;;  %p2275_p13 = pneg %p2274_p12 }
  0x19   : > { %170 = vperm.xlu1 %2271, %v147_v13   ;;  %164 = vperm.xlu0 %2270, %v145_v14   ;;  %v146_v18 = vld [vmem:[%s2436_s5 + $0x8] sm:$0xff]  ;;  %v149_v23 = vld [vmem:[%s2436_s5 + $0x20] sm:$0xff]  ;;  %v152_v27 = vld [vmem:[%s2436_s5 + $0x38] sm:$0xff]  ;;  %v2501_v44 = vpack.c.bf16 %v561_v43, %v554_v42  ;;  %v582_v2 = vand.u32 4294901760, %v581_v61  ;;  %v594_v4 = vand.u32 4294901760, %v593_v0  ;;  %v601_v5 = vand.u32 4294901760, %v600_v1 }
  0x1a   : > { %v150_v22 = vld [vmem:[%s2436_s5 + $0x28] sm:$0xff]  ;;  %v151_v28 = vld [vmem:[%s2436_s5 + $0x30] sm:$0xff]  ;;  %v153_v30 = vld [vmem:[%s2436_s5 + $0x40] sm:$0xff]  ;;  %v2520_v58 = vpack.c.bf16 %v575_v55, %v568_v54  ;;  %v589_v3 = vand.u32 4294901760, %v588_v62  ;;  %v2532_v15 = vpack.c.bf16 %v558_v32, %v551_v31  ;;  %v2534_v16 = vpack.c.bf16 %v572_v46, %v565_v45 }
  0x1b   : > { %2110 = vmatpush3.bf16.msra.mxu0 %v2462_v19  ;;  %2062 = vmatpush3.bf16.msra.mxu1 %v2462_v19  ;;  %v154_v29 = vld [vmem:[%s2436_s5 + $0x48] sm:$0xff]  ;;  %v156_v33 = vld [vmem:[%s2436_s5 + $0x58] sm:$0xff]  ;;  %v155_v34 = vld [vmem:[%s2436_s5 + $0x50] sm:$0xff]  ;;  %v595_v7 = vsub.f32 %v593_v0, %v594_v4  ;;  %v602_v8 = vsub.f32 %v600_v1, %v601_v5  ;;  %v2528_v11 = vpack.c.bf16 %v601_v5, %v594_v4  ;;  %v161_v20 = vlaneseq }
  0x1c   : > { %2112 = vmatprep.subr.bf16.mxu0 %v2484_v26  ;;  %2064 = vmatprep.subr.bf16.mxu1 %v2484_v26  ;;  %v158_v40 = vld [vmem:[%s2436_s5 + $0x68] sm:$0xff]  ;;  %v157_v41 = vld [vmem:[%s2436_s5 + $0x60] sm:$0xff]  ;;  %v160_v47 = vld [vmem:[%s2436_s5 + $0x78] sm:$0xff]  ;;  %v2526_v6 = vpack.c.bf16 %v589_v3, %v582_v2  ;;  %v2337_v24 = vmov 0.0  }
  0x1d   : > { %173 = vperm.xlu1 %2271, %v148_v17   ;;  %167 = vperm.xlu0 %2270, %v146_v18   ;;  %v159_v48 = vld [vmem:[%s2436_s5 + $0x70] sm:$0xff]  ;;  %v596_v12 = vand.u32 4294901760, %v595_v7  ;;  %v603_v13 = vand.u32 4294901760, %v602_v8  ;;  %v2536_v17 = vpack.c.bf16 %v586_v57, %v579_v56  ;;  %v2538_v18 = vpack.c.bf16 %v600_v1, %v593_v0  ;;  %s2276_s5 = sshll.u32 %s2338_s4, 4  ;;  %s2277_s5 = int_to_ptr.vmem [resolvable:$false] %s2276_s5 }
  0x1e   : > { %v2540_v21 = vand.u32 127, %v161_v20  ;;  %s2278_s6 = scalar_lea.vmem %s2277_s5, 4096  ;;  %p2279_p0 = scmp.lt.s32.totalorder %s2870_s27, %s2277_s5 }
  0x1f   : > { %2114 = vmatpush3.bf16.msra.mxu0 %v2484_v26  ;;  %2066 = vmatpush3.bf16.msra.mxu1 %v2484_v26  ;;  %v2530_v14 = vpack.c.bf16 %v603_v13, %v596_v12  ;;  %p2280_p1 = scmp.lt.s32.totalorder %s2278_s6, %s2272_s3 }
  0x20   : > { %2116 = vmatprep.subr.bf16.mxu0 %v2496_v39  ;;  %2068 = vmatprep.subr.bf16.mxu1 %v2501_v44 }
  0x21   : > { %179 = vperm.xlu1 %2271, %v150_v22   ;;  %176 = vperm.xlu0 %2270, %v149_v23   ;;  %p2281_p2 = por %p2280_p1, %p2279_p0 }
  0x23   : > { %p2282_p3 = pnand %p2281_p2, %p2275_p13 }
  0x25   : > { %185 = vperm.xlu1 %2271, %v152_v27   ;;  %182 = vperm.xlu0 %2270, %v151_v28  }
  0x29   : > { %191 = vperm.xlu1 %2271, %v154_v29   ;;  %188 = vperm.xlu0 %2270, %v153_v30  }
  0x2d   : > { %197 = vperm.xlu1 %2271, %v156_v33   ;;  %194 = vperm.xlu0 %2270, %v155_v34  }
  0x31   : > { %203 = vperm.xlu1 %2271, %v158_v40   ;;  %200 = vperm.xlu0 %2270, %v157_v41  }
  0x35   : > { %209 = vperm.xlu1 %2271, %v160_v47   ;;  %206 = vperm.xlu0 %2270, %v159_v48  }
  0x98   : > { %v171_v22 = vpop.permute.xlu1 %170  ;;  %v165_v23 = vpop.permute.xlu0 %164 }
  0x99   : > { %vm213_vm1 = vcmp.eq.s32.totalorder %v171_v22, %v2540_v21  ;;  %vm211_vm2 = vcmp.eq.s32.totalorder %v165_v23, %v2540_v21 }
  0x9a   : > { %v2545_v25 = vsel %vm213_vm1, 1.0, %v2337_v24  ;;  %v2548_v27 = vsel %vm211_vm2, 1.0, %v2337_v24 }
  0x9b   : > { %v275_v28 = vsel %vm267_vm0, %v2545_v25, 0  ;;  %v269_v29 = vsel %vm267_vm0, %v2548_v27, 0 }
  0x9c   : > { %v2554_v30 = vsub.f32 %v275_v28, %v275_v28  ;;  %v2556_v31 = vsub.f32 %v269_v29, %v269_v29  ;;  %v174_v32 = vpop.permute.xlu1 %173  ;;  %v168_v33 = vpop.permute.xlu0 %167 }
  0x9d   : > { %vm214_vm3 = vcmp.eq.s32.totalorder %v174_v32, %v2540_v21  ;;  %vm212_vm4 = vcmp.eq.s32.totalorder %v168_v33, %v2540_v21 }
  0x9e   : > { %v2561_v34 = vsel %vm214_vm3, 1.0, %v2337_v24  ;;  %v2564_v35 = vsel %vm212_vm4, 1.0, %v2337_v24  ;;  %v391_v36 = vand.u32 4294901760, %v2556_v31  ;;  %v411_v40 = vand.u32 4294901760, %v2554_v30 }
  0x9f   : > { %v278_v37 = vsel %vm267_vm0, %v2561_v34, 0  ;;  %v272_v38 = vsel %vm267_vm0, %v2564_v35, 0 }
  0xa0   : > { %v2572_v41 = vsub.f32 %v278_v37, %v278_v37  ;;  %v2574_v42 = vsub.f32 %v272_v38, %v272_v38  ;;  %v180_v43 = vpop.permute.xlu1 %179  ;;  %1947 = vmatprep.mubr.f32.mxu0 %v391_v36  ;;  %v177_v45 = vpop.permute.xlu0 %176  ;;  %v392_v46 = vsub.f32 %v2556_v31, %v391_v36  ;;  %v412_v55 = vsub.f32 %v2554_v30, %v411_v40 }
  0xa1   : > { %vm216_vm5 = vcmp.eq.s32.totalorder %v180_v43, %v2540_v21  ;;  %vm215_vm6 = vcmp.eq.s32.totalorder %v177_v45, %v2540_v21 }
  0xa2   : > { %v2580_v47 = vsel %vm216_vm5, 1.0, %v2337_v24  ;;  %v2583_v48 = vsel %vm215_vm6, 1.0, %v2337_v24  ;;  %v393_v49 = vand.u32 4294901760, %v392_v46  ;;  %v401_v50 = vand.u32 4294901760, %v2574_v42 }
  0xa3   : > { %v284_v51 = vsel %vm267_vm0, %v2580_v47, 0  ;;  %v281_v52 = vsel %vm267_vm0, %v2583_v48, 0  ;;  %v421_v54 = vand.u32 4294901760, %v2572_v41 }
  0xa4   : > { %v2592_v56 = vsub.f32 %v284_v51, %v284_v51  ;;  %v2594_v57 = vsub.f32 %v281_v52, %v281_v52  ;;  %v186_v59 = vpop.permute.xlu1 %185  ;;  %1827 = vmatprep.mubr.f32.mxu1 %v393_v49  ;;  %1948 = vmatmul.mubr.f32.vlgmr.msra.gmra.mrb[0].mxu0 %v401_v50  ;;  %v183_v60 = vpop.permute.xlu0 %182  ;;  %v402_v61 = vsub.f32 %v2574_v42, %v401_v50 }
  0xa5   : > { %vm218_vm7 = vcmp.eq.s32.totalorder %v186_v59, %v2540_v21  ;;  %vm217_vm8 = vcmp.eq.s32.totalorder %v183_v60, %v2540_v21  ;;  %1950 = vmatprep.mubr.f32.mxu0 %v411_v40  ;;  %2118 = vmatpush3.bf16.msra.mxu0 %v2496_v39  ;;  %v422_v62 = vsub.f32 %v2572_v41, %v421_v54  ;;  %v413_v39 = vand.u32 4294901760, %v412_v55 }
  0xa6   : > { %v2602_v0 = vsel %vm218_vm7, 1.0, %v2337_v24  ;;  %v2605_v1 = vsel %vm217_vm8, 1.0, %v2337_v24  ;;  %v403_v2 = vand.u32 4294901760, %v402_v61  ;;  %v431_v3 = vand.u32 4294901760, %v2594_v57  ;;  %2120 = vmatprep.subr.bf16.mxu0 %v2512_v53 }
  0xa7   : > { %v290_v4 = vsel %vm267_vm0, %v2602_v0, 0  ;;  %v287_v5 = vsel %vm267_vm0, %v2605_v1, 0  ;;  %v441_v7 = vand.u32 4294901760, %v2592_v56  ;;  %v423_v23 = vand.u32 4294901760, %v422_v62 }
  0xa8   : > { %v2614_v8 = vsub.f32 %v290_v4, %v290_v4  ;;  %v2616_v12 = vsub.f32 %v287_v5, %v287_v5  ;;  %v192_v13 = vpop.permute.xlu1 %191  ;;  %1828 = vmatmul.mubr.f32.vlgmr.msra.gmra.mrb[0].mxu1 %v403_v2  ;;  %1951 = vmatmul.mubr.f32.gmra.mrb[2].mxu0 %v421_v54  ;;  %v189_v20 = vpop.permute.xlu0 %188  ;;  %v432_v22 = vsub.f32 %v2594_v57, %v431_v3 }
  0xa9   : > { %vm220_vm9 = vcmp.eq.s32.totalorder %v192_v13, %v2540_v21  ;;  %2070 = vmatpush3.bf16.msra.mxu1 %v2501_v44  ;;  %vm219_vm10 = vcmp.eq.s32.totalorder %v189_v20, %v2540_v21  ;;  %1830 = vmatprep.mubr.f32.mxu1 %v413_v39  ;;  %v442_v28 = vsub.f32 %v2592_v56, %v441_v7 }
  0xaa   : > { %v2624_v29 = vsel %vm220_vm9, 1.0, %v2337_v24  ;;  %v2627_v32 = vsel %vm219_vm10, 1.0, %v2337_v24  ;;  %1953 = vmatprep.mubr.f32.mxu0 %v431_v3  ;;  %v433_v33 = vand.u32 4294901760, %v432_v22  ;;  %v451_v36 = vand.u32 4294901760, %v2616_v12  ;;  %2072 = vmatprep.subr.bf16.mxu1 %v2520_v58 }
  0xab   : > { %v296_v44 = vsel %vm267_vm0, %v2624_v29, 0  ;;  %v293_v37 = vsel %vm267_vm0, %v2627_v32, 0  ;;  %v461_v38 = vand.u32 4294901760, %v2614_v8  ;;  %2122 = vmatpush3.bf16.msra.mxu0 %v2512_v53  ;;  %v443_v50 = vand.u32 4294901760, %v442_v28 }
  0xac   : > { %v2637_v40 = vsub.f32 %v296_v44, %v296_v44  ;;  %v2639_v43 = vsub.f32 %v293_v37, %v293_v37  ;;  %v198_v45 = vpop.permute.xlu1 %197  ;;  %1831 = vmatmul.mubr.f32.gmra.mrb[2].mxu1 %v423_v23  ;;  %1954 = vmatmul.mubr.f32.gmra.mrb[4].mxu0 %v441_v7  ;;  %v195_v46 = vpop.permute.xlu0 %194  ;;  %v452_v49 = vsub.f32 %v2616_v12, %v451_v36 }
  0xad   : > { %vm222_vm11 = vcmp.eq.s32.totalorder %v198_v45, %v2540_v21  ;;  %vm221_vm12 = vcmp.eq.s32.totalorder %v195_v46, %v2540_v21  ;;  %1833 = vmatprep.mubr.f32.mxu1 %v433_v33  ;;  %1956 = vmatprep.mubr.f32.mxu0 %v451_v36  ;;  %v462_v51 = vsub.f32 %v2614_v8, %v461_v38 }
  0xae   : > { %v2646_v53 = vsel %vm222_vm11, 1.0, %v2337_v24  ;;  %v2649_v52 = vsel %vm221_vm12, 1.0, %v2337_v24  ;;  %2074 = vmatpush3.bf16.msra.mxu1 %v2520_v58  ;;  %v453_v54 = vand.u32 4294901760, %v452_v49  ;;  %v471_v55 = vand.u32 4294901760, %v2639_v43  ;;  %2124 = vmatprep.subr.bf16.mxu0 %v2522_v63 }
  0xaf   : > { %v302_v59 = vsel %vm267_vm0, %v2646_v53, 0  ;;  %v299_v60 = vsel %vm267_vm0, %v2649_v52, 0  ;;  %v481_v61 = vand.u32 4294901760, %v2637_v40  ;;  %2076 = vmatprep.subr.bf16.mxu1 %v2526_v6  ;;  %2126 = vmatpush3.bf16.msra.mxu0 %v2522_v63  ;;  %v463_v5 = vand.u32 4294901760, %v462_v51 }
  0xb0   : > { %v2661_v62 = vsub.f32 %v302_v59, %v302_v59  ;;  %v2663_v58 = vsub.f32 %v299_v60, %v299_v60  ;;  %v204_v2 = vpop.permute.xlu1 %203  ;;  %1834 = vmatmul.mubr.f32.gmra.mrb[4].mxu1 %v443_v50  ;;  %1957 = vmatmul.mubr.f32.gmra.mrb[6].mxu0 %v461_v38  ;;  %v201_v3 = vpop.permute.xlu0 %200  ;;  %v472_v4 = vsub.f32 %v2639_v43, %v471_v55 }
  0xb1   : > { %vm224_vm13 = vcmp.eq.s32.totalorder %v204_v2, %v2540_v21  ;;  %vm223_vm14 = vcmp.eq.s32.totalorder %v201_v3, %v2540_v21  ;;  %1836 = vmatprep.mubr.f32.mxu1 %v453_v54  ;;  %1959 = vmatprep.mubr.f32.mxu0 %v471_v55  ;;  %v482_v39 = vsub.f32 %v2637_v40, %v481_v61 }
  0xb2   : > { %v2670_v63 = vsel %vm224_vm13, 1.0, %v2337_v24  ;;  %v2673_v7 = vsel %vm223_vm14, 1.0, %v2337_v24  ;;  %v473_v13 = vand.u32 4294901760, %v472_v4  ;;  %v491_v20 = vand.u32 4294901760, %v2663_v58  ;;  %2078 = vmatpush3.bf16.msra.mxu1 %v2526_v6  ;;  %2128 = vmatprep.subr.bf16.mxu0 %v2528_v11 }
  0xb3   : > { %v308_v22 = vsel %vm267_vm0, %v2670_v63, 0  ;;  %v305_v23 = vsel %vm267_vm0, %v2673_v7, 0  ;;  %v501_v28 = vand.u32 4294901760, %v2661_v62  ;;  %2080 = vmatprep.subr.bf16.mxu1 %v2530_v14  ;;  %2130 = vmatpush3.bf16.msra.mxu0 %v2528_v11  ;;  %v483_v38 = vand.u32 4294901760, %v482_v39 }
  0xb4   : > { %v2685_v33 = vsub.f32 %v308_v22, %v308_v22  ;;  %v2687_v36 = vsub.f32 %v305_v23, %v305_v23  ;;  %v210_v44 = vpop.permute.xlu1 %209  ;;  %1837 = vmatmul.mubr.f32.gmra.mrb[6].mxu1 %v463_v5  ;;  %1960 = vmatmul.mubr.f32.gmra.mrb[8].mxu0 %v481_v61  ;;  %v207_v6 = vpop.permute.xlu0 %206  ;;  %v492_v37 = vsub.f32 %v2663_v58, %v491_v20 }
  0xb5   : > { %vm226_vm15 = vcmp.eq.s32.totalorder %v210_v44, %v2540_v21  ;;  %vm225_vm1 = vcmp.eq.s32.totalorder %v207_v6, %v2540_v21  ;;  %1839 = vmatprep.mubr.f32.mxu1 %v473_v13  ;;  %1962 = vmatprep.mubr.f32.mxu0 %v491_v20  ;;  %v502_v45 = vsub.f32 %v2661_v62, %v501_v28 }
  0xb6   : > { %v2694_v11 = vsel %vm226_vm15, 1.0, %v2337_v24  ;;  %v2697_v46 = vsel %vm225_vm1, 1.0, %v2337_v24  ;;  %v493_v49 = vand.u32 4294901760, %v492_v37  ;;  %v511_v50 = vand.u32 4294901760, %v2687_v36  ;;  %2082 = vmatpush3.bf16.msra.mxu1 %v2530_v14  ;;  %2132 = vmatprep.subr.bf16.mxu0 %v2423_v9 }
  0xb7   : > { %v314_v21 = vsel %vm267_vm0, %v2694_v11, 0  ;;  %v311_v51 = vsel %vm267_vm0, %v2697_v46, 0  ;;  %v521_v54 = vand.u32 4294901760, %v2685_v33  ;;  %2084 = vmatprep.subr.bf16.mxu1 %v2532_v15  ;;  %v503_v59 = vand.u32 4294901760, %v502_v45 }
  0xb8   : > { %v2708_v55 = vsub.f32 %v314_v21, %v314_v21  ;;  %v2710_v24 = vsub.f32 %v311_v51, %v311_v51  ;;  %1840 = vmatmul.mubr.f32.gmra.mrb[8].mxu1 %v483_v38  ;;  %1963 = vmatmul.mubr.f32.gmra.mrb[10].mxu0 %v501_v28  ;;  %v512_v14 = vsub.f32 %v2687_v36, %v511_v50 }
  0xb9   : > { %1842 = vmatprep.mubr.f32.mxu1 %v493_v49  ;;  %1965 = vmatprep.mubr.f32.mxu0 %v511_v50  ;;  %v522_v2 = vsub.f32 %v2685_v33, %v521_v54 }
  0xba   : > { %v513_v60 = vand.u32 4294901760, %v512_v14  ;;  %v531_v61 = vand.u32 4294901760, %v2710_v24  ;;  %v541_v3 = vand.u32 4294901760, %v2708_v55 }
  0xbb   : > { %v523_v5 = vand.u32 4294901760, %v522_v2 }
  0xbc   : > { %1843 = vmatmul.mubr.f32.gmra.mrb[10].mxu1 %v503_v59  ;;  %1966 = vmatmul.mubr.f32.gmra.mrb[12].mxu0 %v521_v54  ;;  %v532_v4 = vsub.f32 %v2710_v24, %v531_v61  ;;  %v542_v13 = vsub.f32 %v2708_v55, %v541_v3 }
  0xbd   : > { %1845 = vmatprep.mubr.f32.mxu1 %v513_v60  ;;  %1968 = vmatprep.mubr.f32.mxu0 %v531_v61 }
  0xbe   : > { %v533_v39 = vand.u32 4294901760, %v532_v4  ;;  %v543_v20 = vand.u32 4294901760, %v542_v13 }
  0xc0   : > { %1846 = vmatmul.mubr.f32.gmra.mrb[12].mxu1 %v523_v5  ;;  %1969 = vmatmul.mubr.f32.gmra.mrb[14].mxu0 %v541_v3 }
  0xc1   : > { %1848 = vmatprep.mubr.f32.mxu1 %v533_v39  ;;  %1987 = vmatprep.mubr.msk.f32.mxu0 %vm267_vm0, %v2548_v27 }
  0xc4   : > { %1849 = vmatmul.mubr.f32.gmra.mrb[14].mxu1 %v543_v20  ;;  %1988 = vmatmul.mubr.msk.f32.vlgmr.msra.gmra.mrb[0].mxu0 %vm267_vm0, %v2564_v35 }
  0xc5   : > { %1867 = vmatprep.mubr.msk.f32.mxu1 %vm267_vm0, %v2548_v27  ;;  %1990 = vmatprep.mubr.msk.f32.mxu0 %vm267_vm0, %v2545_v25 }
  0xc6   : > { %2134 = vmatpush3.bf16.msra.mxu0 %v2423_v9 }
  0xc7   : > { %2136 = vmatprep.subr.bf16.mxu0 %v2429_v10 }
  0xc8   : > { %1868 = vmatmul.mubr.msk.f32.vlgmr.msra.gmra.mrb[0].mxu1 %vm267_vm0, %v2564_v35  ;;  %1991 = vmatmul.mubr.msk.f32.gmra.mrb[2].mxu0 %vm267_vm0, %v2561_v34 }
  0xc9   : > { %2086 = vmatpush3.bf16.msra.mxu1 %v2532_v15  ;;  %1870 = vmatprep.mubr.msk.f32.mxu1 %vm267_vm0, %v2545_v25 }
  0xca   : > { %1993 = vmatprep.mubr.msk.f32.mxu0 %vm267_vm0, %v2583_v48  ;;  %2088 = vmatprep.subr.bf16.mxu1 %v2534_v16 }
  0xcb   : > { %2138 = vmatpush3.bf16.msra.mxu0 %v2429_v10 }
  0xcc   : > { %1871 = vmatmul.mubr.msk.f32.gmra.mrb[2].mxu1 %vm267_vm0, %v2561_v34  ;;  %1994 = vmatmul.mubr.msk.f32.gmra.mrb[4].mxu0 %vm267_vm0, %v2580_v47 }
  0xcd   : > { %1873 = vmatprep.mubr.msk.f32.mxu1 %vm267_vm0, %v2583_v48  ;;  %1996 = vmatprep.mubr.msk.f32.mxu0 %vm267_vm0, %v2605_v1 }
  0xce   : > { %2090 = vmatpush3.bf16.msra.mxu1 %v2534_v16  ;;  %2140 = vmatprep.subr.bf16.mxu0 %v2462_v19 }
  0xcf   : > { %2092 = vmatprep.subr.bf16.mxu1 %v2536_v17  ;;  %2142 = vmatpush3.bf16.msra.mxu0 %v2462_v19 }
  0xd0   : > { %1874 = vmatmul.mubr.msk.f32.gmra.mrb[4].mxu1 %vm267_vm0, %v2580_v47  ;;  %1997 = vmatmul.mubr.msk.f32.gmra.mrb[6].mxu0 %vm267_vm0, %v2602_v0 }
  0xd1   : > { %1876 = vmatprep.mubr.msk.f32.mxu1 %vm267_vm0, %v2605_v1  ;;  %1999 = vmatprep.mubr.msk.f32.mxu0 %vm267_vm0, %v2627_v32 }
  0xd2   : > { %2094 = vmatpush3.bf16.msra.mxu1 %v2536_v17  ;;  %2144 = vmatprep.subr.bf16.mxu0 %v2484_v26 }
  0xd3   : > { %2096 = vmatprep.subr.bf16.mxu1 %v2538_v18  ;;  %2146 = vmatpush3.bf16.msra.mxu0 %v2484_v26 }
  0xd4   : > { %1877 = vmatmul.mubr.msk.f32.gmra.mrb[6].mxu1 %vm267_vm0, %v2602_v0  ;;  %2000 = vmatmul.mubr.msk.f32.gmra.mrb[8].mxu0 %vm267_vm0, %v2624_v29 }
  0xd5   : > { %1879 = vmatprep.mubr.msk.f32.mxu1 %vm267_vm0, %v2627_v32  ;;  %2002 = vmatprep.mubr.msk.f32.mxu0 %vm267_vm0, %v2649_v52 }
  0xd6   : > { %2098 = vmatpush3.bf16.msra.mxu1 %v2538_v18 }
  0xd8   : > { %1880 = vmatmul.mubr.msk.f32.gmra.mrb[8].mxu1 %vm267_vm0, %v2624_v29  ;;  %2003 = vmatmul.mubr.msk.f32.gmra.mrb[10].mxu0 %vm267_vm0, %v2646_v53 }
  0xd9   : > { %1882 = vmatprep.mubr.msk.f32.mxu1 %vm267_vm0, %v2649_v52  ;;  %2005 = vmatprep.mubr.msk.f32.mxu0 %vm267_vm0, %v2673_v7 }
  0xdc   : > { %1883 = vmatmul.mubr.msk.f32.gmra.mrb[10].mxu1 %vm267_vm0, %v2646_v53  ;;  %2006 = vmatmul.mubr.msk.f32.gmra.mrb[12].mxu0 %vm267_vm0, %v2670_v63 }
  0xdd   : > { %1885 = vmatprep.mubr.msk.f32.mxu1 %vm267_vm0, %v2673_v7  ;;  %2008 = vmatprep.mubr.msk.f32.mxu0 %vm267_vm0, %v2697_v46 }
  0xe0   : > { %1886 = vmatmul.mubr.msk.f32.gmra.mrb[12].mxu1 %vm267_vm0, %v2670_v63  ;;  %2009 = vmatmul.mubr.msk.f32.gmra.mrb[14].mxu0 %vm267_vm0, %v2694_v11 }
  0xe1   : > { %1888 = vmatprep.mubr.msk.f32.mxu1 %vm267_vm0, %v2697_v46  ;;  %2027 = vmatprep.mubr.msk.f32.mxu0 %vm267_vm0, %v2548_v27 }
  0xe4   : > { %1889 = vmatmul.mubr.msk.f32.gmra.mrb[14].mxu1 %vm267_vm0, %v2694_v11  ;;  %2028 = vmatmul.mubr.msk.f32.vlgmr.msra.gmra.mrb[0].mxu0 %vm267_vm0, %v2564_v35 }
  0xe5   : > { %1907 = vmatprep.mubr.f32.mxu1 %v2556_v31  ;;  %2030 = vmatprep.mubr.msk.f32.mxu0 %vm267_vm0, %v2545_v25 }
  0xe8   : > { %1908 = vmatmul.mubr.f32.vlgmr.msra.gmra.mrb[0].mxu1 %v2574_v42  ;;  %2031 = vmatmul.mubr.msk.f32.gmra.mrb[2].mxu0 %vm267_vm0, %v2561_v34 }
  0xe9   : > { %1910 = vmatprep.mubr.f32.mxu1 %v2554_v30  ;;  %2033 = vmatprep.mubr.msk.f32.mxu0 %vm267_vm0, %v2583_v48 }
  0xec   : > { %1911 = vmatmul.mubr.f32.gmra.mrb[2].mxu1 %v2572_v41  ;;  %2034 = vmatmul.mubr.msk.f32.gmra.mrb[4].mxu0 %vm267_vm0, %v2580_v47 }
  0xed   : > { %1913 = vmatprep.mubr.f32.mxu1 %v2594_v57  ;;  %2036 = vmatprep.mubr.msk.f32.mxu0 %vm267_vm0, %v2605_v1 }
  0xf0   : > { %1914 = vmatmul.mubr.f32.gmra.mrb[4].mxu1 %v2592_v56  ;;  %2037 = vmatmul.mubr.msk.f32.gmra.mrb[6].mxu0 %vm267_vm0, %v2602_v0 }
  0xf1   : > { %1916 = vmatprep.mubr.f32.mxu1 %v2616_v12  ;;  %2039 = vmatprep.mubr.msk.f32.mxu0 %vm267_vm0, %v2627_v32 }
  0xf4   : > { %1917 = vmatmul.mubr.f32.gmra.mrb[6].mxu1 %v2614_v8  ;;  %2040 = vmatmul.mubr.msk.f32.gmra.mrb[8].mxu0 %vm267_vm0, %v2624_v29 }
  0xf5   : > { %1919 = vmatprep.mubr.f32.mxu1 %v2639_v43  ;;  %2042 = vmatprep.mubr.msk.f32.mxu0 %vm267_vm0, %v2649_v52 }
  0xf8   : > { %1920 = vmatmul.mubr.f32.gmra.mrb[8].mxu1 %v2637_v40  ;;  %2043 = vmatmul.mubr.msk.f32.gmra.mrb[10].mxu0 %vm267_vm0, %v2646_v53 }
  0xf9   : > { %1922 = vmatprep.mubr.f32.mxu1 %v2663_v58  ;;  %2045 = vmatprep.mubr.msk.f32.mxu0 %vm267_vm0, %v2673_v7 }
  0xfc   : > { %1923 = vmatmul.mubr.f32.gmra.mrb[10].mxu1 %v2661_v62  ;;  %2046 = vmatmul.mubr.msk.f32.gmra.mrb[12].mxu0 %vm267_vm0, %v2670_v63 }
  0xfd   : > { %1925 = vmatprep.mubr.f32.mxu1 %v2687_v36  ;;  %2048 = vmatprep.mubr.msk.f32.mxu0 %vm267_vm0, %v2697_v46 }
 0x100   : > { %1926 = vmatmul.mubr.f32.gmra.mrb[12].mxu1 %v2685_v33  ;;  %2049 = vmatmul.mubr.msk.f32.gmra.mrb[14].mxu0 %vm267_vm0, %v2694_v11 }
 0x101   : > { %1928 = vmatprep.mubr.f32.mxu1 %v2710_v24 }
 0x104   : > { %1929 = vmatmul.mubr.f32.gmra.mrb[14].mxu1 %v2708_v55 }
 0x1b7   : > { %v2029_v9 = vpop.f32.mrb[0].mxu0 }
 0x1b8   : > { %v1404_v10 = vpop.f32.mrb[1].mxu0 }
 0x1bb   : > { %v1909_v19 = vpop.f32.mrb[0].mxu1  ;;  %v2032_v26 = vpop.f32.mrb[2].mxu0 }
 0x1bc   : > { %v2147_v15 = vadd.f32 %v2029_v9, %v1909_v19  ;;  %v834_v16 = vpop.f32.mrb[1].mxu1  ;;  %v1416_v17 = vpop.f32.mrb[3].mxu0 }
 0x1bd   : > { %v2148_v18 = vadd.f32 %v1404_v10, %v834_v16 }
 0x1be   : > { %1499 = vst [vmem:[%s2847_s25 + $0x8] sm:$0xff] %v2147_v15 }
 0x1bf   : > { %1498 = vst [vmem:[%s2847_s25] sm:$0xff] %v2148_v18  ;;  %v1912_v25 = vpop.f32.mrb[2].mxu1  ;;  %v2035_v27 = vpop.f32.mrb[4].mxu0 }
 0x1c0   : > { %v2149_v30 = vadd.f32 %v2032_v26, %v1912_v25  ;;  %v848_v31 = vpop.f32.mrb[3].mxu1  ;;  %v1428_v34 = vpop.f32.mrb[5].mxu0 }
 0x1c1   : > { %v2150_v35 = vadd.f32 %v1416_v17, %v848_v31 }
 0x1c2   : > { %1501 = vst [vmem:[%s2847_s25 + $0x18] sm:$0xff] %v2149_v30 }
 0x1c3   : > { %1500 = vst [vmem:[%s2847_s25 + $0x10] sm:$0xff] %v2150_v35  ;;  %v1915_v41 = vpop.f32.mrb[4].mxu1  ;;  %v2038_v42 = vpop.f32.mrb[6].mxu0 }
 0x1c4   : > { %v2151_v47 = vadd.f32 %v2035_v27, %v1915_v41  ;;  %v862_v48 = vpop.f32.mrb[5].mxu1  ;;  %v1440_v56 = vpop.f32.mrb[7].mxu0 }
 0x1c5   : > { %v2152_v57 = vadd.f32 %v1428_v34, %v862_v48 }
 0x1c6   : > { %1503 = vst [vmem:[%s2847_s25 + $0x28] sm:$0xff] %v2151_v47 }
 0x1c7   : > { %1502 = vst [vmem:[%s2847_s25 + $0x20] sm:$0xff] %v2152_v57  ;;  %v1918_v0 = vpop.f32.mrb[6].mxu1  ;;  %v2041_v1 = vpop.f32.mrb[8].mxu0 }
 0x1c8   : > { %v2153_v8 = vadd.f32 %v2038_v42, %v1918_v0  ;;  %v876_v12 = vpop.f32.mrb[7].mxu1  ;;  %v1452_v29 = vpop.f32.mrb[9].mxu0 }
 0x1c9   : > { %v2154_v32 = vadd.f32 %v1440_v56, %v876_v12 }
 0x1ca   : > { %1505 = vst [vmem:[%s2847_s25 + $0x38] sm:$0xff] %v2153_v8 }
 0x1cb   : > { %1504 = vst [vmem:[%s2847_s25 + $0x30] sm:$0xff] %v2154_v32  ;;  %v1921_v40 = vpop.f32.mrb[8].mxu1  ;;  %v2044_v43 = vpop.f32.mrb[10].mxu0 }
 0x1cc   : > { %v2155_v53 = vadd.f32 %v2041_v1, %v1921_v40  ;;  %v890_v52 = vpop.f32.mrb[9].mxu1  ;;  %v1464_v62 = vpop.f32.mrb[11].mxu0 }
 0x1cd   : > { %v2156_v58 = vadd.f32 %v1452_v29, %v890_v52 }
 0x1ce   : > { %1507 = vst [vmem:[%s2847_s25 + $0x48] sm:$0xff] %v2155_v53 }
 0x1cf   : > { %1506 = vst [vmem:[%s2847_s25 + $0x40] sm:$0xff] %v2156_v58  ;;  %v1924_v63 = vpop.f32.mrb[10].mxu1  ;;  %v2047_v7 = vpop.f32.mrb[12].mxu0 }
 0x1d0   : > { %v2157_v22 = vadd.f32 %v2044_v43, %v1924_v63  ;;  %v904_v23 = vpop.f32.mrb[11].mxu1  ;;  %v1476_v28 = vpop.f32.mrb[13].mxu0 }
 0x1d1   : > { %v2158_v33 = vadd.f32 %v1464_v62, %v904_v23 }
 0x1d2   : > { %1509 = vst [vmem:[%s2847_s25 + $0x58] sm:$0xff] %v2157_v22 }
 0x1d3   : > { %1508 = vst [vmem:[%s2847_s25 + $0x50] sm:$0xff] %v2158_v33  ;;  %v1927_v36 = vpop.f32.mrb[12].mxu1  ;;  %v2050_v44 = vpop.f32.mrb[14].mxu0 }
 0x1d4   : > { %v2159_v6 = vadd.f32 %v2047_v7, %v1927_v36  ;;  %v918_v37 = vpop.f32.mrb[13].mxu1  ;;  %v1488_v38 = vpop.f32.mrb[15].mxu0 }
 0x1d5   : > { %v2160_v45 = vadd.f32 %v1476_v28, %v918_v37 }
 0x1d6   : > { %1511 = vst [vmem:[%s2847_s25 + $0x68] sm:$0xff] %v2159_v6 }
 0x1d7   : > { %1510 = vst [vmem:[%s2847_s25 + $0x60] sm:$0xff] %v2160_v45  ;;  %v1930_v11 = vpop.f32.mrb[14].mxu1 }
 0x1d8   : > { %v2161_v46 = vadd.f32 %v2050_v44, %v1930_v11  ;;  %v932_v49 = vpop.f32.mrb[15].mxu1 }
 0x1d9   : > { %v2162_v50 = vadd.f32 %v1488_v38, %v932_v49 }
 0x1da   : > { %1513 = vst [vmem:[%s2847_s25 + $0x78] sm:$0xff] %v2161_v46 }
 0x1db   : > { %1512 = vst [vmem:[%s2847_s25 + $0x70] sm:$0xff] %v2162_v50 }
 0x1dc   : > { %2285 = shalt.err (!%p2282_p3)
}
 0x1dd   : > { %s2286_s7 = scalar_lea.hbm %s2868_s30, 2048  ;;  %s2290_s16 = scalar_lea.hbm %s2919_s2, 4096 }
 0x1de   : > { %p2287_p4 = scmp.ne.s32.totalorder %s2868_s30, %s2286_s7  ;;  %p2291_p9 = scmp.lt.u32.totalorder %s2868_s30, %s2919_s2 }
 0x1df   : > { %p2292_p10 = scmp.lt.u32.totalorder %s2290_s16, %s2286_s7  ;;  %p2294_p12 = scmp.lt.u32.totalorder %s2286_s7, %s2868_s30 }
 0x1e0   : > { %p2288_p7 = pnand %p2287_p4, %p2394_p5 }
 0x1e1   : > { %p2293_p11 = por %p2292_p10, %p2291_p9 }
 0x1e2   : > { %p2289_p8 = pneg %p2288_p7 }
 0x1e3   : > { %p2295_p13 = por %p2294_p12, %p2293_p11 }
 0x1e5   : > { %p2296_p0 = pnand %p2295_p13, %p2289_p8 }
 0x1e7   : > { %2299 = shalt.err (!%p2296_p0)
}
 0x1e8   : > { %s2339_s22 = smov 128   ;;  %s2340_s23 = smov 8  }
 0x1e9   : > { %2227 = dma.vmem_to_hbm [thread:$0]  (%p2394_p5), %s2870_s27, 2048, %s2868_s30, %s2876_s13, %s2339_s22, %s2339_s22, %s2340_s23  }
 0x1ea PF: > { %p2233_p1 = scmp.ge.s32.totalorder %s2334_s12, 2  ;;  %s1543_s24 = sand.u32 1, %s2322_s9  }
 0x1eb   : > { %s1544_s25 = scalar_lea.sflag [#allocation3], %s1543_s24 }
 0x1ec   : > { %p2230_p2 = pnand %p2233_p1, %p2398_p6 }
 0x1ee   : > { %2317 = dma.done.wait (!%p2230_p2), %s1544_s25, 2048  }
 0x1ef   : > { %2319 = vsyncadd (!%p2230_p2), %s1544_s25, 4294965248  ;;  %p12_p3 = scmp.ge.s32.totalorder %s2381_s15, 4   ;;  %s2922_s9 = smov %s2326_s10 }
 0x1f0   : > { %s2923_s10 = smov %s2330_s11  ;;  %s2924_s11 = smov %s2392_s18 }
 0x1f1   : > { %s2925_s12 = smov %s2381_s15  ;;  %14 = sbr.rel (!%p12_p3) target bundleno = 3 (0x3), region = 63 }
 0x1f8   :  { %1549 = vsyncpa [#allocation3], 1 }
 0x1f9   :  { %1551 = vsyncpa [#allocation3 + $0x1], 1 }

</bundles_post_ra>
